<compile_context>
chip_gen: v5e
topology: v5e:2x2
jax: 0.10.0
libtpu: 0.0.40
codegen_flags: <defaults>
</compile_context>

<pallas_src>
import functools

import jax
import jax.numpy as jnp
from jax.experimental import pallas as pl
from jax.experimental.pallas import tpu as pltpu


def _cdiv(a, b):
    return -(-a // b)


def _vmem_capacity_bytes():
    """Per-core VMEM capacity; conservative (v7x) fallback if the query fails."""
    try:
        info = pltpu.get_tpu_info()
        cap = getattr(info, "vmem_capacity_bytes", None)
        if cap:
            return int(cap)
    except Exception:
        pass
    return 64 * 1024 * 1024


def _vmem_limit(block_bytes, cap):
    """vmem_limit_bytes from the actual (double-buffered) block footprint + slack."""
    need = 2 * block_bytes + (8 << 20)   # 2x for in/out double-buffering; slack for weights/scratch
    return int(min(max(need, 32 << 20), int(cap * 0.9)))


# ---------------------------------------------------------------------------
# Resident path: one or more whole (C, HW) slabs live in VMEM for the current
# batch element.  Grid (N,): pool -> MLP -> multiply, x read once, written once.
# Several small scales are processed inside the same kernel invocation.
# ---------------------------------------------------------------------------
def _sfam_resident_kernel(*refs, num_maps, inv_hws):
    xs = refs[:num_maps]
    w1_ref, b1_ref, w2_ref, b2_ref = refs[num_maps:num_maps + 4]
    os = refs[num_maps + 4:num_maps + 4 + num_maps]

    w1 = w1_ref[...].astype(jnp.float32)
    b1 = b1_ref[...].astype(jnp.float32)
    w2 = w2_ref[...].astype(jnp.float32)
    b2 = b2_ref[...].astype(jnp.float32)

    for i in range(num_maps):
        x = xs[i][0]                                               # (C, HW_i), input dtype
        pooled = jnp.sum(x, axis=1, keepdims=True,
                         dtype=jnp.float32) * inv_hws[i]           # (C, 1) f32
        h = jnp.maximum(jnp.dot(w1, pooled,
                                preferred_element_type=jnp.float32) + b1, 0.0)
        a = jnp.dot(w2, h, preferred_element_type=jnp.float32) + b2
        att = jax.nn.sigmoid(a)                                    # (C, 1) f32
        os[i][0] = x * att.astype(os[i].dtype)                     # lane-broadcast multiply


def _sfam_resident_call(xfs, params, cap):
    """xfs: list of (N, C, HW_i) arrays sharing N, C, dtype. One fused launch."""
    w1, b1, w2, b2 = params
    N, C, _ = xfs[0].shape
    Cmid = w1.shape[0]
    num_maps = len(xfs)
    inv_hws = tuple(1.0 / xf.shape[2] for xf in xfs)

    in_specs = [pl.BlockSpec((1, C, xf.shape[2]), lambda n: (n, 0, 0)) for xf in xfs]
    in_specs += [
        pl.BlockSpec((Cmid, C), lambda n: (0, 0)),
        pl.BlockSpec((Cmid, 1), lambda n: (0, 0)),
        pl.BlockSpec((C, Cmid), lambda n: (0, 0)),
        pl.BlockSpec((C, 1), lambda n: (0, 0)),
    ]
    out_specs = tuple(pl.BlockSpec((1, C, xf.shape[2]), lambda n: (n, 0, 0)) for xf in xfs)
    out_shape = tuple(jax.ShapeDtypeStruct(xf.shape, xf.dtype) for xf in xfs)

    block_bytes = sum(2 * C * xf.shape[2] * jnp.dtype(xf.dtype).itemsize for xf in xfs)
    kernel = functools.partial(_sfam_resident_kernel, num_maps=num_maps, inv_hws=inv_hws)

    res = pl.pallas_call(
        kernel,
        out_shape=out_shape,
        grid_spec=pltpu.PrefetchScalarGridSpec(
            num_scalar_prefetch=0,
            grid=(N,),
            in_specs=in_specs,
            out_specs=out_specs,
        ),
        compiler_params=pltpu.CompilerParams(
            dimension_semantics=("parallel",),
            vmem_limit_bytes=_vmem_limit(block_bytes, cap),
        ),
    )(*xfs, w1, b1, w2, b2)
    if not isinstance(res, (list, tuple)):
        res = [res]
    return list(res)


# ---------------------------------------------------------------------------
# Two-phase path for slabs that do not fit VMEM.  One launch, grid (N, 2, tiles):
#   phase 0: tiled pooled sum (lane-wide f32 accumulator, masked ragged tail),
#            then fc1/relu/fc2/sigmoid into a VMEM-resident (C,1) attention vector
#            at the last tile.
#   phase 1: stream x again and multiply (lane-dense 128-aligned stores).
# ---------------------------------------------------------------------------
def _sfam_two_phase_kernel(x_ref, w1_ref, b1_ref, w2_ref, b2_ref, o_ref,
                           acc_ref, att_ref, *, hw, hw_t):
    phase = pl.program_id(1)
    t = pl.program_id(2)
    last_t = pl.num_programs(2) - 1

    @pl.when(phase == 0)
    def _pool_phase():
        @pl.when(t == 0)
        def _():
            acc_ref[...] = jnp.zeros_like(acc_ref)

        x = x_ref[0].astype(jnp.float32)                           # (C, hw_t)
        if hw % hw_t != 0:
            # Mask the ragged tail so OOB padding doesn't corrupt the mean.
            lane = jax.lax.broadcasted_iota(jnp.int32, x.shape, 1) + t * hw_t
            x = jnp.where(lane < hw, x, 0.0)
        # Lane-wide accumulation: hw_t//128 element-wise VPU adds per tile; the
        # cross-lane (XLU) reduce happens once, in the epilogue below.
        part = x[:, 0:128]
        for i in range(1, hw_t // 128):
            part = part + x[:, i * 128:(i + 1) * 128]
        acc_ref[...] += part

        @pl.when(t == last_t)
        def _():
            pooled = jnp.sum(acc_ref[...], axis=1, keepdims=True) * (1.0 / hw)  # (C,1)
            w1 = w1_ref[...].astype(jnp.float32)
            b1 = b1_ref[...].astype(jnp.float32)
            w2 = w2_ref[...].astype(jnp.float32)
            b2 = b2_ref[...].astype(jnp.float32)
            h = jnp.maximum(jnp.dot(w1, pooled,
                                    preferred_element_type=jnp.float32) + b1, 0.0)
            a = jnp.dot(w2, h, preferred_element_type=jnp.float32) + b2
            att_ref[...] = jax.nn.sigmoid(a)                       # (C, 1) f32

    @pl.when(phase == 1)
    def _apply_phase():
        o_ref[0] = x_ref[0] * att_ref[...].astype(o_ref.dtype)


def _sfam_two_phase_call(xf, params, cap, tile_budget_bytes):
    w1, b1, w2, b2 = params
    N, C, HW = xf.shape
    Cmid = w1.shape[0]
    itemsize = jnp.dtype(xf.dtype).itemsize

    # Fixed 128-aligned tile within the per-block budget (never the old full-HW
    # fallback), so stores stay lane-dense and VMEM stays bounded for any H*W.
    max_lanes = max(128, min(4096, (tile_budget_bytes // max(C * itemsize, 1)) // 128 * 128))
    hw_pad = _cdiv(HW, 128) * 128
    hw_t = min(max_lanes, hw_pad)
    n_tiles = _cdiv(HW, hw_t)

    block_bytes = 2 * C * hw_t * itemsize   # one x block + one out block
    kernel = functools.partial(_sfam_two_phase_kernel, hw=HW, hw_t=hw_t)

    return pl.pallas_call(
        kernel,
        out_shape=jax.ShapeDtypeStruct((N, C, HW), xf.dtype),
        grid_spec=pltpu.PrefetchScalarGridSpec(
            num_scalar_prefetch=0,
            grid=(N, 2, n_tiles),
            in_specs=[
                pl.BlockSpec((1, C, hw_t), lambda n, p, t: (n, 0, t)),
                pl.BlockSpec((Cmid, C), lambda n, p, t: (0, 0)),
                pl.BlockSpec((Cmid, 1), lambda n, p, t: (0, 0)),
                pl.BlockSpec((C, Cmid), lambda n, p, t: (0, 0)),
                pl.BlockSpec((C, 1), lambda n, p, t: (0, 0)),
            ],
            # Phase 0 parks the output window at tile 0 (no writeback happens until
            # phase 1 tile 0 fills it); phase 1 streams lane-dense tiles.
            out_specs=pl.BlockSpec((1, C, hw_t), lambda n, p, t: (n, 0, t * p)),
            scratch_shapes=[pltpu.VMEM((C, 128), jnp.float32),   # pooled-sum accumulator
                            pltpu.VMEM((C, 1), jnp.float32)],    # attention vector
        ),
        compiler_params=pltpu.CompilerParams(
            # The accumulator/attention scratch requires the phase/tile axes to run
            # sequentially ("arbitrary"); only the batch axis may be core-split.
            dimension_semantics=("parallel", "arbitrary", "arbitrary"),
            vmem_limit_bytes=_vmem_limit(block_bytes, cap),
        ),
    )(xf, w1, b1, w2, b2)


# ---------------------------------------------------------------------------
# Top-level forward.
# ---------------------------------------------------------------------------
def sfam_forward(xs_nchw, params, *, fuse_budget_bytes=None, tile_budget_bytes=None):
    """xs_nchw: list of (N, C, H, W) arrays (PyTorch NCHW). Weights shared across scales."""
    cap = _vmem_capacity_bytes()
    if fuse_budget_bytes is None:
        # Per-batch slab bytes (summed over a fused group) kept VMEM-resident;
        # double-buffered in+out => ~4x this in VMEM.  v7x: 4 MiB, v5e/v6e: 8 MiB.
        fuse_budget_bytes = cap // 16
    if tile_budget_bytes is None:
        # Per-block budget for the tiled path.  v7x: ~2 MiB, v5e/v6e: ~4 MiB.
        tile_budget_bytes = cap // 32

    xfs, shapes = [], []
    for x in xs_nchw:
        N, C, H, W = x.shape
        shapes.append((N, C, H, W))
        xfs.append(x.reshape(N, C, H * W))   # contiguous collapse: no data movement

    sizes = [xf.shape[1] * xf.shape[2] * jnp.dtype(xf.dtype).itemsize for xf in xfs]
    outs = [None] * len(xfs)

    # Greedily pack resident-size scales into fused groups (one launch per group).
    group, group_bytes = [], 0

    def _flush():
        nonlocal group, group_bytes
        if group:
            res = _sfam_resident_call([xfs[i] for i in group], params, cap)
            for gi, o in zip(group, res):
                outs[gi] = o
            group, group_bytes = [], 0

    for i, sz in enumerate(sizes):
        if sz <= fuse_budget_bytes:
            if group and group_bytes + sz > fuse_budget_bytes:
                _flush()
            group.append(i)
            group_bytes += sz
        else:
            outs[i] = _sfam_two_phase_call(xfs[i], params, cap, tile_budget_bytes)
    _flush()

    return [o.reshape(s) for o, s in zip(outs, shapes)]


def make_params(key, C, Cmid, dtype=jnp.float32):
    """fc1: Conv2d(C, Cmid, 1) -> weight (Cmid, C); fc2: Conv2d(Cmid, C, 1) -> weight (C, Cmid)."""
    k1, k2, k3, k4 = jax.random.split(key, 4)
    w1 = (jax.random.normal(k1, (Cmid, C)) * (1.0 / jnp.sqrt(C))).astype(dtype)
    b1 = (jax.random.normal(k2, (Cmid, 1)) * 0.1).astype(dtype)
    w2 = (jax.random.normal(k3, (C, Cmid)) * (1.0 / jnp.sqrt(Cmid))).astype(dtype)
    b2 = (jax.random.normal(k4, (C, 1)) * 0.1).astype(dtype)
    return w1, b1, w2, b2


def ref_forward(xs_nchw, params):
    """Pure-JAX reference matching the PyTorch forward (NCHW)."""
    w1, b1, w2, b2 = params
    outs = []
    for x in xs_nchw:
        pooled = jnp.mean(x, axis=(2, 3))                       # (N, C)
        h = jnp.maximum(pooled @ w1.T + b1[:, 0], 0.0)          # (N, Cmid)
        a = h @ w2.T + b2[:, 0]                                 # (N, C)
        att = jax.nn.sigmoid(a)[:, :, None, None]
        outs.append(x * att)
    return outs


if __name__ == "__main__":
    # Small SFAM config: planes=16, num_levels=4 -> C=64, Cmid=C//16=4,
    # num_scales=3 feature maps at decreasing spatial resolution.
    planes, num_levels, num_scales = 16, 4, 3
    C = planes * num_levels
    Cmid = C // 16
    N = 2
    spatial = [16, 8, 4]

    key = jax.random.PRNGKey(0)
    kx, kp = jax.random.split(key)
    xkeys = jax.random.split(kx, num_scales)
    xs = [jax.random.normal(xkeys[i], (N, C, s, s), jnp.float32)
          for i, s in enumerate(spatial)]
    params = make_params(kp, C, Cmid)

    refs = ref_forward(xs, params)

    # Default path: all three small scales pack into ONE fused pallas_call (grid (N,)).
    outs = sfam_forward(xs, params)
    outs = [jax.block_until_ready(o) for o in outs]
    for o, r in zip(outs, refs):
        assert o.shape == r.shape and o.dtype == r.dtype
        assert jnp.allclose(o, r, atol=1e-5, rtol=1e-5), "resident path mismatch vs reference"

    # Also force the two-phase (over-budget) path with 128-lane tiles on the same data
    # so the tiled/masked pooling and phase-split multiply are validated as well.
    outs2 = sfam_forward(xs, params, fuse_budget_bytes=0, tile_budget_bytes=1)
    outs2 = [jax.block_until_ready(o) for o in outs2]
    for o, r in zip(outs2, refs):
        assert o.shape == r.shape and o.dtype == r.dtype
        assert jnp.allclose(o, r, atol=1e-5, rtol=1e-5), "two-phase path mismatch vs reference"

    print("KERNEL_OK")
</pallas_src>

<mosaic_0001>
module attributes {stable_mosaic.version = 11 : i64} {
  func.func @_sfam_resident_kernel(%arg0: i32, %arg1: memref<1x64x256xf32, #tpu.memory_space<vmem>>, %arg2: memref<1x64x64xf32, #tpu.memory_space<vmem>>, %arg3: memref<1x64x16xf32, #tpu.memory_space<vmem>>, %arg4: memref<4x64xf32, #tpu.memory_space<vmem>>, %arg5: memref<4x1xf32, #tpu.memory_space<vmem>>, %arg6: memref<64x4xf32, #tpu.memory_space<vmem>>, %arg7: memref<64x1xf32, #tpu.memory_space<vmem>>, %arg8: memref<1x64x256xf32, #tpu.memory_space<vmem>>, %arg9: memref<1x64x64xf32, #tpu.memory_space<vmem>>, %arg10: memref<1x64x16xf32, #tpu.memory_space<vmem>>) attributes {dimension_semantics = [#tpu.dimension_semantics<parallel>], iteration_bounds = array<i64: 2>, scalar_prefetch = 0 : i64, scratch_operands = 0 : i64, tpu.core_type = #tpu.core_type<tc>, window_params = [{transform_indices = @transform_0, window_bounds = array<i64: 1, 64, 256>}, {transform_indices = @transform_1, window_bounds = array<i64: 1, 64, 64>}, {transform_indices = @transform_2, window_bounds = array<i64: 1, 64, 16>}, {pipeline_mode = #tpu.pipeline_mode<synchronous>, transform_indices = @transform_3, window_bounds = array<i64: 4, 64>}, {pipeline_mode = #tpu.pipeline_mode<synchronous>, transform_indices = @transform_4, window_bounds = array<i64: 4, 1>}, {pipeline_mode = #tpu.pipeline_mode<synchronous>, transform_indices = @transform_5, window_bounds = array<i64: 64, 4>}, {pipeline_mode = #tpu.pipeline_mode<synchronous>, transform_indices = @transform_6, window_bounds = array<i64: 64, 1>}, {transform_indices = @transform_7, window_bounds = array<i64: 1, 64, 256>}, {transform_indices = @transform_8, window_bounds = array<i64: 1, 64, 64>}, {transform_indices = @transform_9, window_bounds = array<i64: 1, 64, 16>}]} {
    %c0 = arith.constant 0 : index
    %c0_0 = arith.constant 0 : index
    %0 = vector.load %arg4[%c0, %c0_0] : memref<4x64xf32, #tpu.memory_space<vmem>>, vector<4x64xf32>
    %c0_1 = arith.constant 0 : index
    %c0_2 = arith.constant 0 : index
    %1 = vector.load %arg5[%c0_1, %c0_2] : memref<4x1xf32, #tpu.memory_space<vmem>>, vector<4x1xf32>
    %c0_3 = arith.constant 0 : index
    %c0_4 = arith.constant 0 : index
    %2 = vector.load %arg6[%c0_3, %c0_4] : memref<64x4xf32, #tpu.memory_space<vmem>>, vector<64x4xf32>
    %c0_5 = arith.constant 0 : index
    %c0_6 = arith.constant 0 : index
    %3 = vector.load %arg7[%c0_5, %c0_6] : memref<64x1xf32, #tpu.memory_space<vmem>>, vector<64x1xf32>
    %c0_7 = arith.constant 0 : index
    %c0_8 = arith.constant 0 : index
    %c0_9 = arith.constant 0 : index
    %4 = vector.load %arg1[%c0_7, %c0_8, %c0_9] : memref<1x64x256xf32, #tpu.memory_space<vmem>>, vector<1x64x256xf32>
    %5 = vector.shape_cast %4 : vector<1x64x256xf32> to vector<64x256xf32>
    %cst = arith.constant dense<0.000000e+00> : vector<64xf32>
    %6 = vector.multi_reduction <add>, %5, %cst [1] : vector<64x256xf32> to vector<64xf32>
    %7 = vector.shape_cast %6 : vector<64xf32> to vector<64x1xf32>
    %cst_10 = arith.constant 3.906250e-03 : f32
    %8 = vector.broadcast %cst_10 : f32 to vector<64x1xf32>
    %9 = arith.mulf %7, %8 : vector<64x1xf32>
    %cst_11 = arith.constant dense<0.000000e+00> : vector<4x1xf32>
    %10 = tpu.matmul %0, %9, %cst_11 {dimension_numbers = #tpu.dot_dimension_numbers<[1], [0], [0], [1], [0, 0, 1, 1], [], []>} : vector<4x64xf32>, vector<64x1xf32>, vector<4x1xf32> -> vector<4x1xf32>
    %11 = arith.addf %10, %1 : vector<4x1xf32>
    %cst_12 = arith.constant 0.000000e+00 : f32
    %12 = vector.broadcast %cst_12 : f32 to vector<4x1xf32>
    %13 = arith.maximumf %11, %12 : vector<4x1xf32>
    %cst_13 = arith.constant dense<0.000000e+00> : vector<64x1xf32>
    %14 = tpu.matmul %2, %13, %cst_13 {dimension_numbers = #tpu.dot_dimension_numbers<[1], [0], [0], [1], [0, 0, 1, 1], [], []>} : vector<64x4xf32>, vector<4x1xf32>, vector<64x1xf32> -> vector<64x1xf32>
    %15 = arith.addf %14, %3 : vector<64x1xf32>
    %16 = arith.negf %15 : vector<64x1xf32>
    %17 = math.exp %16 : vector<64x1xf32>
    %cst_14 = arith.constant 1.000000e+00 : f32
    %18 = vector.broadcast %cst_14 : f32 to vector<64x1xf32>
    %19 = arith.addf %18, %17 : vector<64x1xf32>
    %20 = arith.divf %18, %19 : vector<64x1xf32>
    %21 = vector.broadcast %20 : vector<64x1xf32> to vector<64x256xf32>
    %22 = arith.mulf %5, %21 : vector<64x256xf32>
    %c0_15 = arith.constant 0 : index
    %c0_16 = arith.constant 0 : index
    %c0_17 = arith.constant 0 : index
    %23 = vector.load %arg8[%c0_15, %c0_16, %c0_17] : memref<1x64x256xf32, #tpu.memory_space<vmem>>, vector<1x64x256xf32>
    %24 = vector.shape_cast %23 : vector<1x64x256xf32> to vector<64x256xf32>
    %25 = vector.shape_cast %22 : vector<64x256xf32> to vector<1x64x256xf32>
    tpu.vector_store %arg8[%c0_15, %c0_16, %c0_17], %25 {strides = array<i32>} : memref<1x64x256xf32, #tpu.memory_space<vmem>>, vector<1x64x256xf32>,
    %c0_18 = arith.constant 0 : index
    %c0_19 = arith.constant 0 : index
    %c0_20 = arith.constant 0 : index
    %26 = vector.load %arg2[%c0_18, %c0_19, %c0_20] : memref<1x64x64xf32, #tpu.memory_space<vmem>>, vector<1x64x64xf32>
    %27 = vector.shape_cast %26 : vector<1x64x64xf32> to vector<64x64xf32>
    %cst_21 = arith.constant dense<0.000000e+00> : vector<64xf32>
    %28 = vector.multi_reduction <add>, %27, %cst_21 [1] : vector<64x64xf32> to vector<64xf32>
    %29 = vector.shape_cast %28 : vector<64xf32> to vector<64x1xf32>
    %cst_22 = arith.constant 1.562500e-02 : f32
    %30 = vector.broadcast %cst_22 : f32 to vector<64x1xf32>
    %31 = arith.mulf %29, %30 : vector<64x1xf32>
    %cst_23 = arith.constant dense<0.000000e+00> : vector<4x1xf32>
    %32 = tpu.matmul %0, %31, %cst_23 {dimension_numbers = #tpu.dot_dimension_numbers<[1], [0], [0], [1], [0, 0, 1, 1], [], []>} : vector<4x64xf32>, vector<64x1xf32>, vector<4x1xf32> -> vector<4x1xf32>
    %33 = arith.addf %32, %1 : vector<4x1xf32>
    %cst_24 = arith.constant 0.000000e+00 : f32
    %34 = vector.broadcast %cst_24 : f32 to vector<4x1xf32>
    %35 = arith.maximumf %33, %34 : vector<4x1xf32>
    %cst_25 = arith.constant dense<0.000000e+00> : vector<64x1xf32>
    %36 = tpu.matmul %2, %35, %cst_25 {dimension_numbers = #tpu.dot_dimension_numbers<[1], [0], [0], [1], [0, 0, 1, 1], [], []>} : vector<64x4xf32>, vector<4x1xf32>, vector<64x1xf32> -> vector<64x1xf32>
    %37 = arith.addf %36, %3 : vector<64x1xf32>
    %38 = arith.negf %37 : vector<64x1xf32>
    %39 = math.exp %38 : vector<64x1xf32>
    %cst_26 = arith.constant 1.000000e+00 : f32
    %40 = vector.broadcast %cst_26 : f32 to vector<64x1xf32>
    %41 = arith.addf %40, %39 : vector<64x1xf32>
    %42 = arith.divf %40, %41 : vector<64x1xf32>
    %43 = vector.broadcast %42 : vector<64x1xf32> to vector<64x64xf32>
    %44 = arith.mulf %27, %43 : vector<64x64xf32>
    %c0_27 = arith.constant 0 : index
    %c0_28 = arith.constant 0 : index
    %c0_29 = arith.constant 0 : index
    %45 = vector.load %arg9[%c0_27, %c0_28, %c0_29] : memref<1x64x64xf32, #tpu.memory_space<vmem>>, vector<1x64x64xf32>
    %46 = vector.shape_cast %45 : vector<1x64x64xf32> to vector<64x64xf32>
    %47 = vector.shape_cast %44 : vector<64x64xf32> to vector<1x64x64xf32>
    tpu.vector_store %arg9[%c0_27, %c0_28, %c0_29], %47 {strides = array<i32>} : memref<1x64x64xf32, #tpu.memory_space<vmem>>, vector<1x64x64xf32>,
    %c0_30 = arith.constant 0 : index
    %c0_31 = arith.constant 0 : index
    %c0_32 = arith.constant 0 : index
    %48 = vector.load %arg3[%c0_30, %c0_31, %c0_32] : memref<1x64x16xf32, #tpu.memory_space<vmem>>, vector<1x64x16xf32>
    %49 = vector.shape_cast %48 : vector<1x64x16xf32> to vector<64x16xf32>
    %cst_33 = arith.constant dense<0.000000e+00> : vector<64xf32>
    %50 = vector.multi_reduction <add>, %49, %cst_33 [1] : vector<64x16xf32> to vector<64xf32>
    %51 = vector.shape_cast %50 : vector<64xf32> to vector<64x1xf32>
    %cst_34 = arith.constant 6.250000e-02 : f32
    %52 = vector.broadcast %cst_34 : f32 to vector<64x1xf32>
    %53 = arith.mulf %51, %52 : vector<64x1xf32>
    %cst_35 = arith.constant dense<0.000000e+00> : vector<4x1xf32>
    %54 = tpu.matmul %0, %53, %cst_35 {dimension_numbers = #tpu.dot_dimension_numbers<[1], [0], [0], [1], [0, 0, 1, 1], [], []>} : vector<4x64xf32>, vector<64x1xf32>, vector<4x1xf32> -> vector<4x1xf32>
    %55 = arith.addf %54, %1 : vector<4x1xf32>
    %cst_36 = arith.constant 0.000000e+00 : f32
    %56 = vector.broadcast %cst_36 : f32 to vector<4x1xf32>
    %57 = arith.maximumf %55, %56 : vector<4x1xf32>
    %cst_37 = arith.constant dense<0.000000e+00> : vector<64x1xf32>
    %58 = tpu.matmul %2, %57, %cst_37 {dimension_numbers = #tpu.dot_dimension_numbers<[1], [0], [0], [1], [0, 0, 1, 1], [], []>} : vector<64x4xf32>, vector<4x1xf32>, vector<64x1xf32> -> vector<64x1xf32>
    %59 = arith.addf %58, %3 : vector<64x1xf32>
    %60 = arith.negf %59 : vector<64x1xf32>
    %61 = math.exp %60 : vector<64x1xf32>
    %cst_38 = arith.constant 1.000000e+00 : f32
    %62 = vector.broadcast %cst_38 : f32 to vector<64x1xf32>
    %63 = arith.addf %62, %61 : vector<64x1xf32>
    %64 = arith.divf %62, %63 : vector<64x1xf32>
    %65 = vector.broadcast %64 : vector<64x1xf32> to vector<64x16xf32>
    %66 = arith.mulf %49, %65 : vector<64x16xf32>
    %c0_39 = arith.constant 0 : index
    %c0_40 = arith.constant 0 : index
    %c0_41 = arith.constant 0 : index
    %67 = vector.load %arg10[%c0_39, %c0_40, %c0_41] : memref<1x64x16xf32, #tpu.memory_space<vmem>>, vector<1x64x16xf32>
    %68 = vector.shape_cast %67 : vector<1x64x16xf32> to vector<64x16xf32>
    %69 = vector.shape_cast %66 : vector<64x16xf32> to vector<1x64x16xf32>
    tpu.vector_store %arg10[%c0_39, %c0_40, %c0_41], %69 {strides = array<i32>} : memref<1x64x16xf32, #tpu.memory_space<vmem>>, vector<1x64x16xf32>,
    return
  }
  func.func @transform_0(%arg0: i32) -> (i32, i32, i32) {
    %c0_i32 = arith.constant 0 : i32
    %c0_i32_0 = arith.constant 0 : i32
    %c0_i32_1 = arith.constant 0 : i32
    return %arg0, %c0_i32, %c0_i32_0 : i32, i32, i32
  }
  func.func @transform_1(%arg0: i32) -> (i32, i32, i32) {
    %c0_i32 = arith.constant 0 : i32
    %c0_i32_0 = arith.constant 0 : i32
    %c0_i32_1 = arith.constant 0 : i32
    return %arg0, %c0_i32, %c0_i32_0 : i32, i32, i32
  }
  func.func @transform_2(%arg0: i32) -> (i32, i32, i32) {
    %c0_i32 = arith.constant 0 : i32
    %c0_i32_0 = arith.constant 0 : i32
    %c0_i32_1 = arith.constant 0 : i32
    return %arg0, %c0_i32, %c0_i32_0 : i32, i32, i32
  }
  func.func @transform_3(%arg0: i32) -> (i32, i32) {
    %c0_i32 = arith.constant 0 : i32
    %c0_i32_0 = arith.constant 0 : i32
    %c0_i32_1 = arith.constant 0 : i32
    return %c0_i32, %c0_i32_0 : i32, i32
  }
  func.func @transform_4(%arg0: i32) -> (i32, i32) {
    %c0_i32 = arith.constant 0 : i32
    %c0_i32_0 = arith.constant 0 : i32
    %c0_i32_1 = arith.constant 0 : i32
    return %c0_i32, %c0_i32_0 : i32, i32
  }
  func.func @transform_5(%arg0: i32) -> (i32, i32) {
    %c0_i32 = arith.constant 0 : i32
    %c0_i32_0 = arith.constant 0 : i32
    %c0_i32_1 = arith.constant 0 : i32
    return %c0_i32, %c0_i32_0 : i32, i32
  }
  func.func @transform_6(%arg0: i32) -> (i32, i32) {
    %c0_i32 = arith.constant 0 : i32
    %c0_i32_0 = arith.constant 0 : i32
    %c0_i32_1 = arith.constant 0 : i32
    return %c0_i32, %c0_i32_0 : i32, i32
  }
  func.func @transform_7(%arg0: i32) -> (i32, i32, i32) {
    %c0_i32 = arith.constant 0 : i32
    %c0_i32_0 = arith.constant 0 : i32
    %c0_i32_1 = arith.constant 0 : i32
    return %arg0, %c0_i32, %c0_i32_0 : i32, i32, i32
  }
  func.func @transform_8(%arg0: i32) -> (i32, i32, i32) {
    %c0_i32 = arith.constant 0 : i32
    %c0_i32_0 = arith.constant 0 : i32
    %c0_i32_1 = arith.constant 0 : i32
    return %arg0, %c0_i32, %c0_i32_0 : i32, i32, i32
  }
  func.func @transform_9(%arg0: i32) -> (i32, i32, i32) {
    %c0_i32 = arith.constant 0 : i32
    %c0_i32_0 = arith.constant 0 : i32
    %c0_i32_1 = arith.constant 0 : i32
    return %arg0, %c0_i32, %c0_i32_0 : i32, i32, i32
  }
}

</mosaic_0001>

<bundles_post_ra>
// kernel: tpu_custom_call.1
= control target key start
LH: loop header
LB: loop body
LE: loop exit
PB: predicated region body
PF: predicated region fallthrough
CT: control target
= control target key end

     0   :  { %s3004_s0 = inlined_call_operand.hbm [shape: f32[2,64,256], index: 0, kind: input, shape index: {}]   ;;  %s3005_s1 = inlined_call_operand.vmem [shape: f32[2,64,64], index: 1, kind: input, shape index: {}]   ;;  %s3006_s2 = inlined_call_operand.vmem [shape: f32[2,64,16], index: 2, kind: input, shape index: {}]   ;;  %s3007_s3 = inlined_call_operand.vmem [shape: f32[4,64], index: 3, kind: input, shape index: {}]   ;;  %s3008_s4 = inlined_call_operand.vmem [shape: f32[4,1], index: 4, kind: input, shape index: {}]   ;;  %s3009_s5 = inlined_call_operand.vmem [shape: f32[64,4], index: 5, kind: input, shape index: {}]   ;;  %s3010_s6 = inlined_call_operand.vmem [shape: f32[64,1], index: 6, kind: input, shape index: {}]   ;;  %s3011_s7 = inlined_call_operand.hbm [shape: f32[2,64,256], index: 7, kind: output, shape index: {0}]   ;;  %s3012_s8 = inlined_call_operand.hbm [shape: f32[2,64,64], index: 8, kind: output, shape index: {1}]   ;;  %s3013_s9 = inlined_call_operand.vmem [shape: f32[2,64,16], index: 9, kind: output, shape index: {2}]  }
   0x1   :  { %3017 = sst [smem:[#allocation14_spill]] %s3004_s0 }
   0x2   :  { %3018 = sst [smem:[#allocation15_spill]] %s3005_s1 }
   0x3   :  { %3019 = sst [smem:[#allocation16_spill]] %s3006_s2 }
   0x4   :  { %15 = vsyncpa [#allocation3], 0 }
   0x5   :  { %17 = vsyncpa [#allocation3 + $0x1], 0 }
   0x6   :  { %18 = vsyncpa [#allocation4], 0 }
   0x7   :  { %20 = vsyncpa [#allocation4 + $0x1], 0 }
   0x8   :  { %21 = vsyncpa [#allocation7], 0 }
   0x9   :  { %23 = vsyncpa [#allocation7 + $0x1], 0  ;;  %s2089_s30 = smov 0   ;;  %s2091_s10 = smov 0  }
   0xa   :  { %s2093_s11 = smov 0   ;;  %s2095_s12 = smov 0  }
   0xb LB: > { %3020 = sst [smem:[#allocation11_spill]] %s2026_s11  ;;  %s2110_s13 = sadd.s32 4294967295, %s2030_s12   ;;  %s2030_s12 = sphi %s2095_s12, %s3080_s12   ;;  %s2026_s11 = sphi %s2093_s11, %s3082_s11   ;;  %s2022_s10 = sphi %s2091_s10, %s3084_s10   ;;  %s2018_s30 = sphi %s2089_s30, %s3083_s30  }
   0xc   : > { %s1629_s14 = sadd.s32 4294967294, %s2030_s12   ;;  %s2114_s15 = sadd.s32 1, %s2030_s12  }
   0xd   : > { %3021 = sst [smem:[#allocation12_spill]] %s2114_s15  ;;  %s36_s16 = sadd.s32 1, %s2026_s11 }
   0xe   : > { %s33_s17 = ssub.s32 %s2030_s12, %s2114_s15  ;;  %p43_p0 = scmp.ne.s32.totalorder %s2026_s11, %s2022_s10 }
   0xf   : > { %p34_p1 = scmp.eq.s32.totalorder %s33_s17, 0  ;;  %p44_p2 = scmp.eq.s32.totalorder %s2030_s12, 0 }
  0x10   : > { %p49_p3 = scmp.ne.s32.totalorder %s2022_s10, %s2018_s30  ;;  %p50_p4 = scmp.eq.s32.totalorder %s2110_s13, 0 }
  0x11   : > { %s2126_s18 = scalar_select %p34_p1, %s2026_s11, %s36_s16  }
  0x12   : > { %p2128_p5 = por %p44_p2, %p43_p0  ;;  %p2132_p6 = por %p50_p4, %p49_p3 }
  0x13   : > { %3022 = sst [smem:[#allocation13_spill]] %s2126_s18  ;;  %p209_p7 = scmp.eq.s32.totalorder %s2110_s13, 1 }
  0x14   : > { %p215_p8 = scmp.eq.s32.totalorder %s1629_s14, 1  ;;  %p1730_p10 = scmp.lt.s32.totalorder %s2030_s12, 2 }
  0x15   : > { %p2139_p11 = por %p209_p7, %p43_p0  ;;  %s299_s23 = sand.u32 1, %s2026_s11  }
  0x16   : > { %p2143_p12 = por %p215_p8, %p49_p3  ;;  %s1707_s24 = sshll.u32 %s2030_s12, 7 }
  0x17   : > { %s1632_s25 = sshll.u32 %s299_s23, 7  ;;  %s3027_s0 = sld [smem:[#allocation14_spill]] }
  0x18   : > { %s303_s14 = scalar_lea.vmem [#allocation2], %s1632_s25  ;;  %p2154_p13 = pnand %p1730_p10, %p2128_p5 }
  0x19   : > { %s311_s16 = sshll.u32 %s303_s14, 4  ;;  %p1635_p0 = scmp.ge.s32.totalorder %s2030_s12, 1  ;;  %s312_s16 = int_to_ptr.vmem [resolvable:$true] %s311_s16 }
  0x1a   : > { %p335_p1 = scmp.lt.s32.totalorder %s2030_s12, 3  ;;  %s300_s18 = scalar_lea.sflag [#allocation3], %s299_s23 }
  0x1b   : > { %p1906_p3 = pneg %p2154_p13 }
  0x1d   : > { %s308_s28 = scalar_lea.hbm %s3027_s0, %s1707_s24  ;;  %s1909_s19 = scalar_lea.hbm %s3027_s0, 256 }
  0x1e   : > { %s309_s29 = sshll.u32 %s308_s28, 4  ;;  %s310_s29 = int_to_ptr.hbm [resolvable:$true] %s309_s29 }
  0x1f   : > { %s1902_s11 = sshra.s32 %s310_s29, 4  ;;  %s1903_s11 = int_to_ptr.hbm [resolvable:$true] %s1902_s11 }
  0x20   : > { %s1904_s15 = scalar_lea.hbm %s1903_s11, 128  ;;  %p1910_p5 = scmp.lt.s32.totalorder %s1903_s11, %s3027_s0 }
  0x21   : > { %p1905_p2 = scmp.ne.s32.totalorder %s1903_s11, %s1904_s15  ;;  %p1911_p8 = scmp.lt.s32.totalorder %s1909_s19, %s1904_s15 }
  0x23   : > { %p1907_p4 = pnand %p1906_p3, %p1905_p2  ;;  %p1912_p10 = por %p1911_p8, %p1910_p5 }
  0x25   : > { %p1908_p7 = pneg %p1907_p4 }
  0x27   : > { %p1913_p9 = pnand %p1912_p10, %p1908_p7 }
  0x29   : > { %1916 = shalt.err (!%p1913_p9)
}
  0x2a   : > { %s2032_s23 = smov 256   ;;  %s2033_s28 = smov 16  }
  0x2b   : > { %1722 = dma.hbm_to_vmem [thread:$0]  (!%p2154_p13), %s310_s29, 2048, %s312_s16, %s300_s18, %s2032_s23, %s2032_s23, %s2033_s28  }
  0x2c   : > { %p336_p2 = pnand %p1635_p0, %p335_p1 }
  0x2d   : > { %s2175_s14 = sand.u32 (!%p336_p2), 1, %s2022_s10  }
  0x2e   : > { %339 = sbr.rel (%p336_p2) target bundleno = 711 (0x2c7), region = 48  ;;  %s1636_s11 = sshll.u32 (!%p336_p2), %s2175_s14, 7 }
  0x2f   : > { %s342_s15 = scalar_lea.sflag (!%p336_p2), [#allocation3], %s2175_s14  ;;  %s2181_s24 = scalar_lea.vmem (!%p336_p2), [#allocation2], %s1636_s11 }
  0x33   : > { %2005 = dma.done.wait (%p2132_p6), %s342_s15, 2048  }
  0x34   : > { %2007 = vsyncadd (%p2132_p6), %s342_s15, 4294965248  ;;  %p401_p9 = scmp.lt.s32.totalorder %s2110_s13, 1  ;;  %s3029_s1 = sld [smem:[#allocation15_spill]]  ;;  %vm482_vm0 = vcmask 523264   ;;  %v448_v0 = vld [vmem:[%s2181_s24 + $0x70] sm:$0xff]  ;;  %v449_v1 = vld [vmem:[%s2181_s24 + $0x78] sm:$0xff] }
  0x35   : > { %v444_v2 = vld [vmem:[%s2181_s24 + $0x50] sm:$0xff]  ;;  %v471_v3 = vadd.f32 %v449_v1, %v448_v0  ;;  %v445_v4 = vld [vmem:[%s2181_s24 + $0x58] sm:$0xff]  ;;  %v446_v8 = vld [vmem:[%s2181_s24 + $0x60] sm:$0xff]  ;;  %s3030_s2 = sld [smem:[#allocation16_spill]]  ;;  %vm1122_vm1 = vcmask 130048   ;;  %vm532_vm2 = vcmask 1043456  }
  0x36   : > { %s402_s18 = scalar_select %p401_p9, %s2110_s13, 1  ;;  %v465_v6 = vadd.f32 %v445_v4, %v444_v2  ;;  %v447_v9 = vld [vmem:[%s2181_s24 + $0x68] sm:$0xff]  ;;  %v440_v10 = vld [vmem:[%s2181_s24 + $0x30] sm:$0xff]  ;;  %v441_v11 = vld [vmem:[%s2181_s24 + $0x38] sm:$0xff]  ;;  %vm507_vm3 = vcmask 31744  }
  0x37   : > { %472 = vadd.xlane.f32.xlu0 %v471_v3  ;;  %v442_v12 = vld [vmem:[%s2181_s24 + $0x40] sm:$0xff]  ;;  %v443_v13 = vld [vmem:[%s2181_s24 + $0x48] sm:$0xff]  ;;  %v468_v14 = vadd.f32 %v447_v9, %v446_v8  ;;  %v459_v15 = vadd.f32 %v441_v11, %v440_v10  ;;  %v436_v19 = vld [vmem:[%s2181_s24 + $0x10] sm:$0xff]  ;;  %s1638_s27 = sshll.u32 %s2175_s14, 6  ;;  %s2857_s23 = scalar_lea.vmem [#allocation5], %s1636_s11 }
  0x38   : > { %s2189_s29 = sshll.u32 %s402_s18, 6  ;;  %466 = vadd.xlane.f32.xlu1 %v465_v6  ;;  %v462_v16 = vadd.f32 %v443_v13, %v442_v12  ;;  %v438_v17 = vld [vmem:[%s2181_s24 + $0x20] sm:$0xff]  ;;  %v439_v18 = vld [vmem:[%s2181_s24 + $0x28] sm:$0xff]  ;;  %v437_v20 = vld [vmem:[%s2181_s24 + $0x18] sm:$0xff]  ;;  %s2862_s28 = scalar_lea.vmem [#allocation6], %s1638_s27 }
  0x39   : > { %v456_v22 = vadd.f32 %v439_v18, %v438_v17  ;;  %v453_v23 = vadd.f32 %v437_v20, %v436_v19  ;;  %v434_v26 = vld [vmem:[%s2181_s24] sm:$0xff]  ;;  %v435_v27 = vld [vmem:[%s2181_s24 + $0x8] sm:$0xff]  ;;  %s2882_s18 = scalar_lea.vmem %s3013_s9, %s2189_s29  ;;  %s1451_s19 = sshll.u32 %s2857_s23, 4  ;;  %s2938_s19 = int_to_ptr.vmem [resolvable:$true] %s1451_s19 }
  0x3a   : > { %s2195_s25 = scalar_lea.vmem %s3029_s1, %s2189_s29  ;;  %v450_v30 = vadd.f32 %v435_v27, %v434_v26  ;;  %v416_v13 = vld [vmem:[%s3007_s3] sm:$0xf]  ;;  %s1712_s27 = sshll.u32 %s2110_s13, 6 }
  0x3b   : > { %v808_v5 = vld [vmem:[%s2195_s25 + $0x38] sm:$0xff]  ;;  %v807_v21 = vld [vmem:[%s2195_s25 + $0x30] sm:$0xff]  ;;  %v806_v25 = vld [vmem:[%s2195_s25 + $0x28] sm:$0xff]  ;;  %s2225_s26 = scalar_lea.vmem %s3030_s2, %s2189_s29  ;;  %s1711_s29 = sshll.u32 %s2110_s13, 7 }
  0x3c   : > { %v830_v7 = vsel %vm482_vm0, %v808_v5, 0.0  ;;  %v827_v24 = vsel %vm482_vm0, %v807_v21, 0.0  ;;  %v805_v28 = vld [vmem:[%s2195_s25 + $0x20] sm:$0xff]  ;;  %v824_v29 = vsel %vm482_vm0, %v806_v25, 0.0  ;;  %v804_v32 = vld [vmem:[%s2195_s25 + $0x18] sm:$0xff]  ;;  %v803_v33 = vld [vmem:[%s2195_s25 + $0x10] sm:$0xff]  ;;  %s1450_s20 = scalar_lea.hbm %s3011_s7, %s1711_s29  ;;  %s2943_s1 = scalar_lea.hbm %s3012_s8, %s1712_s27 }
  0x3d   : > { %831 = vadd.xlane.f32.xlu2 %v830_v7  ;;  %v821_v31 = vsel %vm482_vm0, %v805_v28, 0.0  ;;  %v1121_v34 = vld [vmem:[%s2225_s26 + $0x38] sm:$0xff]  ;;  %v818_v35 = vsel %vm482_vm0, %v804_v32, 0.0  ;;  %v815_v36 = vsel %vm482_vm0, %v803_v33, 0.0  ;;  %v1120_v38 = vld [vmem:[%s2225_s26 + $0x30] sm:$0xff]  ;;  %v1119_v39 = vld [vmem:[%s2225_s26 + $0x28] sm:$0xff] }
  0x3e   : > { %v1144_v37 = vsel %vm1122_vm1, %v1121_v34, 0.0  ;;  %v802_v40 = vld [vmem:[%s2195_s25 + $0x8] sm:$0xff]  ;;  %v1141_v41 = vsel %vm1122_vm1, %v1120_v38, 0.0  ;;  %v1138_v42 = vsel %vm1122_vm1, %v1119_v39, 0.0  ;;  %v801_v44 = vld [vmem:[%s2195_s25] sm:$0xff]  ;;  %v1117_v45 = vld [vmem:[%s2225_s26 + $0x18] sm:$0xff] }
  0x3f   : > { %469 = vadd.xlane.f32.xlu0 %v468_v14  ;;  %v812_v43 = vsel %vm482_vm0, %v802_v40, 0.0  ;;  %v1118_v46 = vld [vmem:[%s2225_s26 + $0x20] sm:$0xff]  ;;  %v809_v47 = vsel %vm482_vm0, %v801_v44, 0.0  ;;  %v1132_v48 = vsel %vm1122_vm1, %v1117_v45, 0.0  ;;  %v1116_v50 = vld [vmem:[%s2225_s26 + $0x10] sm:$0xff]  ;;  %v1115_v52 = vld [vmem:[%s2225_s26 + $0x8] sm:$0xff] }
  0x40   : > { %463 = vadd.xlane.f32.xlu1 %v462_v16  ;;  %v1135_v49 = vsel %vm1122_vm1, %v1118_v46, 0.0  ;;  %v1114_v51 = vld [vmem:[%s2225_s26] sm:$0xff]  ;;  %v1129_v53 = vsel %vm1122_vm1, %v1116_v50, 0.0  ;;  %v1126_v55 = vsel %vm1122_vm1, %v1115_v52, 0.0  ;;  %v419_v46 = vld [vmem:[%s3009_s5 + $0x8] sm:$0xff]  ;;  %s1453_s11 = sshll.u32 %s1450_s20, 4  ;;  %s1454_s11 = int_to_ptr.hbm [resolvable:$true] %s1453_s11 }
  0x41   : > { %v1123_v54 = vsel %vm1122_vm1, %v1114_v51, 0.0  ;;  %v418_v45 = vld [vmem:[%s3009_s5] sm:$0xff]  ;;  %v421_v51 = vld [vmem:[%s3009_s5 + $0x18] sm:$0xff]  ;;  %s1468_s29 = sshll.u32 %s2862_s28, 4  ;;  %s1470_s13 = sshll.u32 %s2943_s1, 4  ;;  %s2951_s29 = int_to_ptr.vmem [resolvable:$true] %s1468_s29  ;;  %s1471_s13 = int_to_ptr.hbm [resolvable:$true] %s1470_s13 }
  0x42   : > { %v422_v52 = vld [vmem:[%s3009_s5 + $0x20] sm:$0xff]  ;;  %s1429_s16 = scalar_lea.sflag [#allocation4], %s2175_s14  ;;  %s1946_s17 = sshra.s32 %s1454_s11, 4  ;;  %s1947_s17 = int_to_ptr.hbm [resolvable:$true] %s1946_s17 }
  0x43   : > { %s1948_s0 = scalar_lea.hbm %s1947_s17, 128  ;;  %p1953_p1 = scmp.lt.s32.totalorder %s1947_s17, %s3011_s7 }
  0x44   : > { %p1949_p6 = scmp.ne.s32.totalorder %s1947_s17, %s1948_s0 }
  0x45   : > { %460 = vadd.xlane.f32.xlu2 %v459_v15 }
  0x46   : > { %p1950_p13 = pnand %p1949_p6, %p2139_p11 }
  0x47   : > { %457 = vadd.xlane.f32.xlu0 %v456_v22 }
  0x48   : > { %828 = vadd.xlane.f32.xlu1 %v827_v24  ;;  %p1951_p0 = pneg %p1950_p13 }
  0x4d   : > { %454 = vadd.xlane.f32.xlu2 %v453_v23 }
  0x4f   : > { %825 = vadd.xlane.f32.xlu0 %v824_v29 }
  0x50   : > { %451 = vadd.xlane.f32.xlu1 %v450_v30 }
  0x55   : > { %822 = vadd.xlane.f32.xlu2 %v821_v31 }
  0x57   : > { %819 = vadd.xlane.f32.xlu0 %v818_v35 }
  0x58   : > { %1145 = vadd.xlane.f32.xlu1 %v1144_v37 }
  0x5d   : > { %816 = vadd.xlane.f32.xlu2 %v815_v36 }
  0x5f   : > { %1142 = vadd.xlane.f32.xlu0 %v1141_v41  ;;  %v417_v41 = vld [vmem:[%s3008_s4] sm:$0xf] }
  0x60   : > { %813 = vadd.xlane.f32.xlu1 %v812_v43 }
  0x65   : > { %1139 = vadd.xlane.f32.xlu2 %v1138_v42 }
  0x67   : > { %810 = vadd.xlane.f32.xlu0 %v809_v47  ;;  %v420_v47 = vld [vmem:[%s3009_s5 + $0x10] sm:$0xff] }
  0x68   : > { %1136 = vadd.xlane.f32.xlu1 %v1135_v49 }
  0x6d   : > { %1133 = vadd.xlane.f32.xlu2 %v1132_v48 }
  0x6f   : > { %1130 = vadd.xlane.f32.xlu0 %v1129_v53 }
  0x70   : > { %1127 = vadd.xlane.f32.xlu1 %v1126_v55 }
  0x75   : > { %1124 = vadd.xlane.f32.xlu2 %v1123_v54 }
  0xaa   : > { %v473_v56 = vpop.xlane.xlu0 %472 }
  0xab   : > { %v467_v58 = vpop.xlane.xlu1 %466  ;;  %v481_v59 = vmul.f32 0.00390625, %v473_v56  ;;  %v423_v56 = vld [vmem:[%s3009_s5 + $0x28] sm:$0xff] }
  0xac   : > { %v479_v0 = vmul.f32 0.00390625, %v467_v58  ;;  %v425_v58 = vld [vmem:[%s3009_s5 + $0x38] sm:$0xff] }
  0xad   : > { %494 = vmatpush.msra.mxu0 %v481_v59  ;;  %v2314_v59 = vld [vmem:[%s3010_s6] sm:$0xff] }
  0xb0   : > { %v832_v57 = vpop.xlane.xlu2 %831 }
  0xb1   : > { %v840_v12 = vmul.f32 0.015625, %v832_v57  ;;  %v424_v57 = vld [vmem:[%s3009_s5 + $0x30] sm:$0xff] }
  0xb2   : > { %v470_v60 = vpop.xlane.xlu0 %469 }
  0xb3   : > { %v480_v62 = vmul.f32 0.00390625, %v470_v60  ;;  %v464_v63 = vpop.xlane.xlu1 %463 }
  0xb4   : > { %v478_v1 = vmul.f32 0.00390625, %v464_v63  ;;  %v2320_v63 = vld [vmem:[%s3010_s6 + $0x8] sm:$0xff] }
  0xb5   : > { %495 = vmatpush.msra.mxu0 %v480_v62 }
  0xb7   : > { %496 = vmatpush.msra.mxu0 %v479_v0  ;;  %v2034_v0 = vmov 0  }
  0xb8   : > { %v461_v61 = vpop.xlane.xlu2 %460  ;;  %1771 = vset.pattern.permute.xlu0 %v2034_v0  ;;  %1772 = vset.pattern.permute.xlu1 %v2034_v0 }
  0xb9   : > { %v477_v2 = vmul.f32 0.00390625, %v461_v61  ;;  %497 = vmatpush.msra.mxu0 %v478_v1  ;;  %1773 = vset.pattern.permute.xlu2 %v2034_v0 }
  0xba   : > { %v458_v3 = vpop.xlane.xlu0 %457 }
  0xbb   : > { %v829_v5 = vpop.xlane.xlu1 %828  ;;  %v476_v6 = vmul.f32 0.00390625, %v458_v3  ;;  %498 = vmatpush.msra.mxu0 %v477_v2 }
  0xbc   : > { %v839_v14 = vmul.f32 0.015625, %v829_v5 }
  0xbd   : > { %499 = vmatpush.msra.mxu0 %v476_v6  ;;  %v2326_v6 = vld [vmem:[%s3010_s6 + $0x10] sm:$0xff] }
  0xc0   : > { %v455_v4 = vpop.xlane.xlu2 %454 }
  0xc1   : > { %v475_v7 = vmul.f32 0.00390625, %v455_v4 }
  0xc2   : > { %v826_v8 = vpop.xlane.xlu0 %825 }
  0xc3   : > { %500 = vmatpush.msra.mxu0 %v475_v7  ;;  %v452_v10 = vpop.xlane.xlu1 %451  ;;  %v838_v15 = vmul.f32 0.015625, %v826_v8 }
  0xc4   : > { %v474_v11 = vmul.f32 0.00390625, %v452_v10 }
  0xc6   : > { %501 = vmatpush.msra.mxu0 %v474_v11 }
  0xc7   : > { %1645 = vmatmul.msk.f32.vlgmr.msra.gmra.mxu0 %vm482_vm0, %v416_v13 }
  0xc8   : > { %v823_v9 = vpop.xlane.xlu2 %822  ;;  %849 = vmatpush.msrb.mxu0 %v840_v12 }
  0xc9   : > { %v837_v16 = vmul.f32 0.015625, %v823_v9 }
  0xca   : > { %850 = vmatpush.msrb.mxu0 %v839_v14  ;;  %v820_v17 = vpop.xlane.xlu0 %819  ;;  %v2332_v14 = vld [vmem:[%s3010_s6 + $0x18] sm:$0xff] }
  0xcb   : > { %v836_v19 = vmul.f32 0.015625, %v820_v17  ;;  %v1146_v20 = vpop.xlane.xlu1 %1145 }
  0xcc   : > { %851 = vmatpush.msrb.mxu0 %v838_v15  ;;  %v1154_v30 = vmul.f32 0.0625, %v1146_v20 }
  0xce   : > { %852 = vmatpush.msrb.mxu0 %v837_v16 }
  0xd0   : > { %v817_v18 = vpop.xlane.xlu2 %816  ;;  %853 = vmatpush.msrb.mxu0 %v836_v19 }
  0xd1   : > { %v835_v21 = vmul.f32 0.015625, %v817_v18 }
  0xd2   : > { %v1143_v22 = vpop.xlane.xlu0 %1142 }
  0xd3   : > { %854 = vmatpush.msrb.mxu0 %v835_v21  ;;  %v814_v24 = vpop.xlane.xlu1 %813  ;;  %v1153_v31 = vmul.f32 0.0625, %v1143_v22 }
  0xd4   : > { %v834_v25 = vmul.f32 0.015625, %v814_v24 }
  0xd6   : > { %855 = vmatpush.msrb.mxu0 %v834_v25 }
  0xd8   : > { %v1140_v23 = vpop.xlane.xlu2 %1139 }
  0xd9   : > { %v1152_v32 = vmul.f32 0.0625, %v1140_v23 }
  0xda   : > { %v811_v26 = vpop.xlane.xlu0 %810 }
  0xdb   : > { %v833_v27 = vmul.f32 0.015625, %v811_v26  ;;  %v1137_v28 = vpop.xlane.xlu1 %1136 }
  0xdc   : > { %v1151_v33 = vmul.f32 0.0625, %v1137_v28 }
  0xdd   : > { %856 = vmatpush.msrb.mxu0 %v833_v27 }
  0xde   : > { %1663 = vmatmul.msk.f32.vlgmr.msrb.gmra.mxu0 %vm482_vm0, %v416_v13 }
  0xdf   : > { %1163 = vmatpush.msra.mxu0 %v1154_v30 }
  0xe0   : > { %v1134_v29 = vpop.xlane.xlu2 %1133 }
  0xe1   : > { %1164 = vmatpush.msra.mxu0 %v1153_v31  ;;  %v1150_v35 = vmul.f32 0.0625, %v1134_v29 }
  0xe2   : > { %v1131_v34 = vpop.xlane.xlu0 %1130 }
  0xe3   : > { %1165 = vmatpush.msra.mxu0 %v1152_v32  ;;  %v1128_v36 = vpop.xlane.xlu1 %1127  ;;  %v1149_v37 = vmul.f32 0.0625, %v1131_v34  ;;  %v2339_v32 = vld [vmem:[%s3010_s6 + $0x20] sm:$0xff] }
  0xe4   : > { %v1148_v39 = vmul.f32 0.0625, %v1128_v36 }
  0xe5   : > { %1166 = vmatpush.msra.mxu0 %v1151_v33 }
  0xe7   : > { %1167 = vmatpush.msra.mxu0 %v1150_v35 }
  0xe8   : > { %v1125_v38 = vpop.xlane.xlu2 %1124 }
  0xe9   : > { %1168 = vmatpush.msra.mxu0 %v1149_v37  ;;  %v1147_v40 = vmul.f32 0.0625, %v1125_v38 }
  0xeb   : > { %1169 = vmatpush.msra.mxu0 %v1148_v39 }
  0xed   : > { %1170 = vmatpush.msra.mxu0 %v1147_v40 }
  0xee   : > { %1681 = vmatmul.msk.f32.vlgmr.msra.gmra.mxu0 %vm482_vm0, %v416_v13 }
 0x144   : > { %v503_v42 = vpop.f32.mrf.mxu0 }
 0x145   : > { %v504_v43 = vadd.f32 %v503_v42, %v417_v41 }
 0x147   : > { %v506_v44 = vmax.f32 %v504_v43, 0.0 }
 0x149   : > { %1646 = vmatpush.msk.msra.mxu1 %vm532_vm2, %v506_v44 }
 0x14a   : > { %1647 = vmatmul.msk.f32.vlgmr.msra.gmra.mxu1 %vm507_vm3, %v418_v45 }
 0x152   : > { %1648 = vmatmul.msk.f32.gmra.mxu1 %vm507_vm3, %v419_v46 }
 0x15a   : > { %1649 = vmatmul.msk.f32.gmra.mxu1 %vm507_vm3, %v420_v47 }
 0x15b   : > { %v858_v48 = vpop.f32.mrf.mxu0 }
 0x15c   : > { %v859_v49 = vadd.f32 %v858_v48, %v417_v41 }
 0x15e   : > { %v861_v50 = vmax.f32 %v859_v49, 0.0 }
 0x160   : > { %1664 = vmatpush.msk.msra.mxu3 %vm532_vm2, %v861_v50 }
 0x161   : > { %1665 = vmatmul.msk.f32.vlgmr.msra.gmra.mxu3 %vm507_vm3, %v418_v45 }
 0x162   : > { %1650 = vmatmul.msk.f32.gmra.mxu1 %vm507_vm3, %v421_v51 }
 0x169   : > { %1666 = vmatmul.msk.f32.gmra.mxu3 %vm507_vm3, %v419_v46 }
 0x16a   : > { %1651 = vmatmul.msk.f32.gmra.mxu1 %vm507_vm3, %v422_v52 }
 0x16b   : > { %v1172_v53 = vpop.f32.mrf.mxu0 }
 0x16c   : > { %v1173_v54 = vadd.f32 %v1172_v53, %v417_v41 }
 0x16e   : > { %v1175_v55 = vmax.f32 %v1173_v54, 0.0 }
 0x170   : > { %1682 = vmatpush.msk.msra.mxu2 %vm532_vm2, %v1175_v55 }
 0x171   : > { %1683 = vmatmul.msk.f32.vlgmr.msra.gmra.mxu2 %vm507_vm3, %v418_v45  ;;  %1667 = vmatmul.msk.f32.gmra.mxu3 %vm507_vm3, %v420_v47 }
 0x172   : > { %1652 = vmatmul.msk.f32.gmra.mxu1 %vm507_vm3, %v423_v56 }
 0x179   : > { %1684 = vmatmul.msk.f32.gmra.mxu2 %vm507_vm3, %v419_v46  ;;  %1668 = vmatmul.msk.f32.gmra.mxu3 %vm507_vm3, %v421_v51 }
 0x17a   : > { %1653 = vmatmul.msk.f32.gmra.mxu1 %vm507_vm3, %v424_v57 }
 0x181   : > { %1685 = vmatmul.msk.f32.gmra.mxu2 %vm507_vm3, %v420_v47  ;;  %1669 = vmatmul.msk.f32.gmra.mxu3 %vm507_vm3, %v422_v52 }
 0x182   : > { %1654 = vmatmul.msk.f32.gmra.mxu1 %vm507_vm3, %v425_v58 }
 0x189   : > { %1686 = vmatmul.msk.f32.gmra.mxu2 %vm507_vm3, %v421_v51  ;;  %1670 = vmatmul.msk.f32.gmra.mxu3 %vm507_vm3, %v423_v56  ;;  %v2352_v51 = vld [vmem:[%s3010_s6 + $0x28] sm:$0xff] }
 0x191   : > { %1687 = vmatmul.msk.f32.gmra.mxu2 %vm507_vm3, %v422_v52  ;;  %1671 = vmatmul.msk.f32.gmra.mxu3 %vm507_vm3, %v424_v57 }
 0x199   : > { %1688 = vmatmul.msk.f32.gmra.mxu2 %vm507_vm3, %v423_v56  ;;  %1672 = vmatmul.msk.f32.gmra.mxu3 %vm507_vm3, %v425_v58 }
 0x1a1   : > { %1689 = vmatmul.msk.f32.gmra.mxu2 %vm507_vm3, %v424_v57 }
 0x1a9   : > { %1690 = vmatmul.msk.f32.gmra.mxu2 %vm507_vm3, %v425_v58 }
 0x1c7   : > { %v553_v60 = vpop.f32.mrf.mxu1 }
 0x1c8   : > { %v554_v61 = vadd.f32 %v553_v60, %v2314_v59 }
 0x1ca   : > { %v1655_v62 = vmul.f32 -1.442695, %v554_v61 }
 0x1cc   : > { %1774 = vpow2.f32 %v1655_v62 }
 0x1cf   : > { %v556_v1 = vpop.f32.mrf.mxu1 }
 0x1d0   : > { %v557_v2 = vadd.f32 %v556_v1, %v2320_v63 }
 0x1d2   : > { %v1775_v3 = vpop.eup %1774  ;;  %v1656_v4 = vmul.f32 -1.442695, %v557_v2 }
 0x1d3   : > { %v601_v5 = vadd.f32 1.0, %v1775_v3 }
 0x1d4   : > { %1776 = vpow2.f32 %v1656_v4 }
 0x1d5   : > { %1778 = vrcp.f32 %v601_v5  ;;  %v620_v15 = vand.u32 2147483648, %v601_v5  ;;  %vm614_vm4 = vweird.f32 %v601_v5  ;;  %v618_v17 = vand.u32 2147483647, %v601_v5 }
 0x1d7   : > { %v559_v7 = vpop.f32.mrf.mxu1  ;;  %v621_v21 = vor.u32 1.1754944e-38, %v620_v15  ;;  %vm619_vm7 = vcmp.eq.f32.partialorder %v618_v17, 8.507059e+37 }
 0x1d8   : > { %v560_v8 = vadd.f32 %v559_v7, %v2326_v6 }
 0x1da   : > { %v1777_v9 = vpop.eup %1776  ;;  %v1657_v10 = vmul.f32 -1.442695, %v560_v8 }
 0x1db   : > { %v1779_v11 = vpop.eup %1778  ;;  %v602_v12 = vadd.f32 1.0, %v1777_v9 }
 0x1dc   : > { %1780 = vpow2.f32 %v1657_v10  ;;  %v610_v13 = vmul.f32 %v1779_v11, %v601_v5  ;;  %vm615_vm5 = vweird.f32 %v1779_v11 }
 0x1dd   : > { %1782 = vrcp.f32 %v602_v12  ;;  %vm616_vm6 = vmor %vm614_vm4, %vm615_vm5  ;;  %vm629_vm8 = vweird.f32 %v602_v12  ;;  %v635_v33 = vand.u32 2147483648, %v602_v12  ;;  %v633_v36 = vand.u32 2147483647, %v602_v12 }
 0x1de   : > { %v611_v16 = vsub.f32 1.0, %v610_v13 }
 0x1df   : > { %v562_v18 = vpop.f32.mrf.mxu1  ;;  %v636_v40 = vor.u32 1.1754944e-38, %v635_v33  ;;  %vm634_vm11 = vcmp.eq.f32.partialorder %v633_v36, 8.507059e+37 }
 0x1e0   : > { %v563_v19 = vadd.f32 %v562_v18, %v2332_v14  ;;  %v612_v20 = vmul.f32 %v1779_v11, %v611_v16  ;;  %v2383_v16 = vld [vmem:[%s3010_s6 + $0x30] sm:$0xff] }
 0x1e2   : > { %v1781_v22 = vpop.eup %1780  ;;  %v1658_v23 = vmul.f32 -1.442695, %v563_v19  ;;  %v613_v24 = vadd.f32 %v1779_v11, %v612_v20 }
 0x1e3   : > { %v1783_v25 = vpop.eup %1782  ;;  %v603_v26 = vadd.f32 1.0, %v1781_v22 }
 0x1e4   : > { %v882_v27 = vpop.f32.mrf.mxu3  ;;  %1784 = vpow2.f32 %v1658_v23  ;;  %v617_v29 = vsel %vm616_vm6, %v1779_v11, %v613_v24  ;;  %v625_v30 = vmul.f32 %v1783_v25, %v602_v12  ;;  %vm630_vm9 = vweird.f32 %v1783_v25 }
 0x1e5   : > { %v883_v28 = vadd.f32 %v882_v27, %v2314_v59  ;;  %1786 = vrcp.f32 %v603_v26  ;;  %v622_v31 = vsel %vm619_vm7, %v621_v21, %v617_v29  ;;  %vm631_vm10 = vmor %vm629_vm8, %vm630_vm9  ;;  %vm644_vm12 = vweird.f32 %v603_v26 }
 0x1e6   : > { %731 = vperm.xlu0 %1771, %v622_v31   ;;  %v626_v35 = vsub.f32 1.0, %v625_v30  ;;  %v648_v57 = vand.u32 2147483647, %v603_v26  ;;  %v650_v58 = vand.u32 2147483648, %v603_v26 }
 0x1e7   : > { %v1673_v34 = vmul.f32 -1.442695, %v883_v28  ;;  %v565_v37 = vpop.f32.mrf.mxu1 }
 0x1e8   : > { %v566_v38 = vadd.f32 %v565_v37, %v2339_v32  ;;  %v627_v39 = vmul.f32 %v1783_v25, %v626_v35  ;;  %vm2370_vm15 = vcmp.eq.f32.partialorder %v648_v57, 8.507059e+37  ;;  %v651_v11 = vor.u32 1.1754944e-38, %v650_v58 }
 0x1e9   : > { %1788 = vpow2.f32 %v1673_v34 }
 0x1ea   : > { %v1785_v41 = vpop.eup %1784  ;;  %v1659_v42 = vmul.f32 -1.442695, %v566_v38  ;;  %v628_v43 = vadd.f32 %v1783_v25, %v627_v39 }
 0x1eb   : > { %v2342_v44 = vpop.eup %1786  ;;  %v2344_v45 = vadd.f32 1.0, %v1785_v41 }
 0x1ec   : > { %v885_v46 = vpop.f32.mrf.mxu3  ;;  %1790 = vpow2.f32 %v1659_v42  ;;  %v632_v48 = vsel %vm631_vm10, %v1783_v25, %v628_v43  ;;  %v640_v49 = vmul.f32 %v2342_v44, %v603_v26  ;;  %vm645_vm13 = vweird.f32 %v2342_v44 }
 0x1ed   : > { %v886_v47 = vadd.f32 %v885_v46, %v2320_v63  ;;  %1792 = vrcp.f32 %v2344_v45  ;;  %v637_v50 = vsel %vm634_vm11, %v636_v40, %v632_v48  ;;  %vm2366_vm14 = vmor %vm644_vm12, %vm645_vm13  ;;  %v665_v12 = vand.u32 2147483648, %v2344_v45 }
 0x1ee   : > { %736 = vperm.xlu1 %1772, %v637_v50   ;;  %v641_v54 = vsub.f32 1.0, %v640_v49  ;;  %vm659_vm3 = vweird.f32 %v2344_v45  ;;  %v663_v25 = vand.u32 2147483647, %v2344_v45 }
 0x1ef   : > { %v1789_v52 = vpop.eup %1788  ;;  %v1674_v53 = vmul.f32 -1.442695, %v886_v47  ;;  %v568_v56 = vpop.f32.mrf.mxu1  ;;  %v2397_v28 = vor.u32 1.1754944e-38, %v665_v12 }
 0x1f0   : > { %v2354_v55 = vadd.f32 1.0, %v1789_v52  ;;  %v569_v60 = vadd.f32 %v568_v56, %v2352_v51  ;;  %v642_v61 = vmul.f32 %v2342_v44, %v641_v54  ;;  %vm2416_vm7 = vcmp.eq.f32.partialorder %v663_v25, 8.507059e+37  ;;  %v2429_v54 = vld [vmem:[%s3010_s6 + $0x38] sm:$0xff] }
 0x1f1   : > { %1794 = vpow2.f32 %v1674_v53 }
 0x1f2   : > { %1796 = vrcp.f32 %v2354_v55  ;;  %v1791_v62 = vpop.eup %1790  ;;  %v1660_v0 = vmul.f32 -1.442695, %v569_v60  ;;  %v643_v1 = vadd.f32 %v2342_v44, %v642_v61  ;;  %v947_v13 = vand.u32 2147483647, %v2354_v55 }
 0x1f3   : > { %v2361_v2 = vpop.eup %1792  ;;  %v2363_v3 = vadd.f32 1.0, %v1791_v62  ;;  %v949_v15 = vand.u32 2147483648, %v2354_v55  ;;  %vm943_vm2 = vweird.f32 %v2354_v55 }
 0x1f4   : > { %v1196_v4 = vpop.f32.mrf.mxu2  ;;  %v888_v5 = vpop.f32.mrf.mxu3  ;;  %v655_v17 = vmul.f32 %v2361_v2, %v2344_v45  ;;  %v647_v20 = vsel %vm2366_vm14, %v2342_v44, %v643_v1  ;;  %vm2400_vm4 = vcmp.eq.f32.partialorder %v947_v13, 8.507059e+37  ;;  %vm660_vm5 = vweird.f32 %v2361_v2 }
 0x1f5   : > { %v1197_v9 = vadd.f32 %v1196_v4, %v2314_v59  ;;  %v889_v10 = vadd.f32 %v888_v5, %v2326_v6  ;;  %1798 = vrcp.f32 %v2363_v3  ;;  %v950_v30 = vor.u32 1.1754944e-38, %v949_v15  ;;  %vm2458_vm13 = vmor %vm659_vm3, %vm660_vm5 }
 0x1f6   : > { %1800 = vpow2.f32 %v1660_v0  ;;  %v656_v24 = vsub.f32 1.0, %v655_v17  ;;  %v2406_v31 = vsel %vm2370_vm15, %v651_v11, %v647_v20  ;;  %vm674_vm8 = vweird.f32 %v2363_v3 }
 0x1f7   : > { %v1795_v59 = vpop.eup %1794  ;;  %v1691_v18 = vmul.f32 -1.442695, %v1197_v9  ;;  %v1675_v19 = vmul.f32 -1.442695, %v889_v10  ;;  %v571_v23 = vpop.f32.mrf.mxu1  ;;  %v678_v48 = vand.u32 2147483647, %v2363_v3 }
 0x1f8   : > { %v1797_v21 = vpop.eup %1796  ;;  %v2390_v22 = vadd.f32 1.0, %v1795_v59  ;;  %v572_v27 = vadd.f32 %v571_v23, %v2383_v16  ;;  %v657_v40 = vmul.f32 %v2361_v2, %v656_v24  ;;  %v680_v49 = vand.u32 2147483648, %v2363_v3 }
 0x1f9   : > { %1802 = vpow2.f32 %v1691_v18  ;;  %v939_v26 = vmul.f32 %v1797_v21, %v2354_v55  ;;  %vm944_vm6 = vweird.f32 %v1797_v21  ;;  %vm2463_vm15 = vcmp.eq.f32.partialorder %v678_v48, 8.507059e+37 }
 0x1fa   : > { %1804 = vrcp.f32 %v2390_v22  ;;  %v1661_v34 = vmul.f32 -1.442695, %v572_v27  ;;  %v962_v38 = vand.u32 2147483647, %v2390_v22  ;;  %v964_v39 = vand.u32 2147483648, %v2390_v22  ;;  %vm945_vm10 = vmor %vm943_vm2, %vm944_vm6 }
 0x1fb   : > { %1806 = vpow2.f32 %v1675_v19  ;;  %v940_v33 = vsub.f32 1.0, %v939_v26  ;;  %v2409_v35 = vpop.eup %1798  ;;  %vm958_vm9 = vweird.f32 %v2390_v22  ;;  %v658_v62 = vadd.f32 %v2361_v2, %v657_v40 }
 0x1fc   : > { %v1199_v36 = vpop.f32.mrf.mxu2  ;;  %v891_v37 = vpop.f32.mrf.mxu3  ;;  %1808 = vpow2.f32 %v1661_v34  ;;  %v670_v47 = vmul.f32 %v2409_v35, %v2363_v3  ;;  %v965_v60 = vor.u32 1.1754944e-38, %v964_v39  ;;  %vm2443_vm11 = vcmp.eq.f32.partialorder %v962_v38, 8.507059e+37 }
 0x1fd   : > { %v1801_v41 = vpop.eup %1800  ;;  %v1200_v42 = vadd.f32 %v1199_v36, %v2320_v63  ;;  %v892_v43 = vadd.f32 %v891_v37, %v2332_v14  ;;  %v941_v44 = vmul.f32 %v1797_v21, %v940_v33  ;;  %vm675_vm14 = vweird.f32 %v2409_v35 }
 0x1fe   : > { %v2435_v58 = vadd.f32 1.0, %v1801_v41  ;;  %v671_v7 = vsub.f32 1.0, %v670_v47  ;;  %v662_v24 = vsel %vm2458_vm13, %v2361_v2, %v658_v62  ;;  %v681_v26 = vor.u32 1.1754944e-38, %v680_v49  ;;  %vm2486_vm3 = vmor %vm674_vm8, %vm675_vm14 }
 0x1ff   : > { %v1803_v50 = vpop.eup %1802  ;;  %v1692_v52 = vmul.f32 -1.442695, %v1200_v42  ;;  %v1676_v63 = vmul.f32 -1.442695, %v892_v43  ;;  %v942_v53 = vadd.f32 %v1797_v21, %v941_v44  ;;  %v574_v61 = vpop.f32.mrf.mxu1  ;;  %v667_v41 = vsel %vm2416_vm7, %v2397_v28, %v662_v24 }
 0x200   : > { %v2431_v56 = vpop.eup %1804  ;;  %v2433_v57 = vadd.f32 1.0, %v1803_v50  ;;  %v575_v9 = vadd.f32 %v574_v61, %v2429_v54  ;;  %v672_v25 = vmul.f32 %v2409_v35, %v671_v7 }
 0x201   : > { %v1807_v0 = vpop.eup %1806  ;;  %1810 = vpow2.f32 %v1692_v52  ;;  %v946_v1 = vsel %vm945_vm10, %v1797_v21, %v942_v53  ;;  %v954_v4 = vmul.f32 %v2431_v56, %v2390_v22  ;;  %vm959_vm12 = vweird.f32 %v2431_v56 }
 0x202   : > { %1812 = vrcp.f32 %v2433_v57  ;;  %v2448_v8 = vadd.f32 1.0, %v1807_v0  ;;  %v951_v55 = vsel %vm2400_vm4, %v950_v30, %v946_v1  ;;  %v1809_v10 = vpop.eup %1808  ;;  %v1662_v18 = vmul.f32 -1.442695, %v575_v9  ;;  %vm960_vm4 = vmor %vm958_vm9, %vm959_vm12 }
 0x203   : > { %1814 = vpow2.f32 %v1676_v63  ;;  %1060 = vperm.xlu2 %1773, %v951_v55   ;;  %v955_v11 = vsub.f32 1.0, %v954_v4  ;;  %v2468_v59 = vadd.f32 1.0, %v1809_v10  ;;  %v1263_v19 = vand.u32 2147483648, %v2433_v57 }
 0x204   : > { %1816 = vrcp.f32 %v2448_v8  ;;  %v1202_v15 = vpop.f32.mrf.mxu2  ;;  %v894_v17 = vpop.f32.mrf.mxu3  ;;  %v1261_v23 = vand.u32 2147483647, %v2433_v57  ;;  %vm1257_vm2 = vweird.f32 %v2433_v57  ;;  %v673_v37 = vadd.f32 %v2409_v35, %v672_v25 }
 0x205   : > { %v1203_v45 = vadd.f32 %v1202_v15, %v2326_v6  ;;  %v895_v20 = vadd.f32 %v894_v17, %v2339_v32  ;;  %v956_v21 = vmul.f32 %v2431_v56, %v955_v11  ;;  %1818 = vrcp.f32 %v2435_v58 }
 0x206   : > { %1820 = vpow2.f32 %v1662_v18  ;;  %v1264_v36 = vor.u32 1.1754944e-38, %v1263_v19  ;;  %vm2500_vm5 = vcmp.eq.f32.partialorder %v1261_v23, 8.507059e+37  ;;  %v977_v44 = vand.u32 2147483647, %v2448_v8 }
 0x207   : > { %v1811_v27 = vpop.eup %1810  ;;  %v1693_v29 = vmul.f32 -1.442695, %v1203_v45  ;;  %v1677_v30 = vmul.f32 -1.442695, %v895_v20  ;;  %v957_v6 = vadd.f32 %v2431_v56, %v956_v21  ;;  %1822 = vrcp.f32 %v2468_v59 }
 0x208   : > { %v1813_v2 = vpop.eup %1812  ;;  %v2490_v34 = vadd.f32 1.0, %v1811_v27  ;;  %v677_v28 = vsel %vm2486_vm3, %v2409_v35, %v673_v37  ;;  %vm973_vm7 = vweird.f32 %v2448_v8  ;;  %vm2535_vm9 = vcmp.eq.f32.partialorder %v977_v44, 8.507059e+37 }
 0x209   : > { %v1815_v38 = vpop.eup %1814  ;;  %1824 = vpow2.f32 %v1693_v29  ;;  %v961_v3 = vsel %vm960_vm4, %v2431_v56, %v957_v6  ;;  %v1253_v39 = vmul.f32 %v1813_v2, %v2433_v57  ;;  %vm1258_vm6 = vweird.f32 %v1813_v2 }
 0x20a   : > { %v2507_v42 = vpop.eup %1816  ;;  %1826 = vrcp.f32 %v2490_v34  ;;  %v2510_v22 = vadd.f32 1.0, %v1815_v38  ;;  %v966_v43 = vsel %vm2443_vm11, %v965_v60, %v961_v3  ;;  %v682_v62 = vsel %vm2463_vm15, %v681_v26, %v677_v28  ;;  %vm1259_vm10 = vmor %vm1257_vm2, %vm1258_vm6 }
 0x20b   : > { %1828 = vpow2.f32 %v1677_v30  ;;  %741 = vperm.xlu2 %1773, %v2406_v31   ;;  %1065 = vperm.xlu1 %1772, %v966_v43   ;;  %v1254_v47 = vsub.f32 1.0, %v1253_v39  ;;  %v969_v46 = vmul.f32 %v2507_v42, %v2448_v8  ;;  %v2521_v48 = vpop.eup %1818  ;;  %v979_v31 = vand.u32 2147483648, %v2448_v8 }
 0x20c   : > { %1830 = vrcp.f32 %v2510_v22  ;;  %v1205_v49 = vpop.f32.mrf.mxu2  ;;  %v897_v50 = vpop.f32.mrf.mxu3  ;;  %vm974_vm8 = vweird.f32 %v2507_v42  ;;  %v1276_v11 = vand.u32 2147483647, %v2490_v34  ;;  %v1278_v20 = vand.u32 2147483648, %v2490_v34 }
 0x20d   : > { %v1821_v52 = vpop.eup %1820  ;;  %v1206_v63 = vadd.f32 %v1205_v49, %v2332_v14  ;;  %v898_v53 = vadd.f32 %v897_v50, %v2352_v51  ;;  %v1255_v35 = vmul.f32 %v1813_v2, %v1254_v47  ;;  %v970_v56 = vsub.f32 1.0, %v969_v46  ;;  %vm2560_vm11 = vmor %vm973_vm7, %vm974_vm8 }
 0x20e   : > { %v2528_v60 = vpop.eup %1822  ;;  %v2530_v61 = vadd.f32 1.0, %v1821_v52  ;;  %v980_v10 = vor.u32 1.1754944e-38, %v979_v31  ;;  %vm1272_vm12 = vweird.f32 %v2490_v34  ;;  %vm2570_vm14 = vcmp.eq.f32.partialorder %v1276_v11, 8.507059e+37 }
 0x20f   : > { %v1825_v1 = vpop.eup %1824  ;;  %v1694_v4 = vmul.f32 -1.442695, %v1206_v63  ;;  %v1678_v14 = vmul.f32 -1.442695, %v898_v53  ;;  %v1256_v5 = vadd.f32 %v1813_v2, %v1255_v35  ;;  %v971_v7 = vmul.f32 %v2507_v42, %v970_v56 }
 0x210   : > { %v1827_v55 = vpop.eup %1826  ;;  %v2540_v9 = vadd.f32 1.0, %v1825_v1  ;;  %1832 = vrcp.f32 %v2530_v61  ;;  %vm988_vm15 = vweird.f32 %v2510_v22  ;;  %v992_v43 = vand.u32 2147483647, %v2510_v22 }
 0x211   : > { %v1829_v12 = vpop.eup %1828  ;;  %1834 = vpow2.f32 %v1694_v4  ;;  %v1260_v13 = vsel %vm1259_vm10, %v1813_v2, %v1256_v5  ;;  %v972_v15 = vadd.f32 %v2507_v42, %v971_v7  ;;  %v1268_v17 = vmul.f32 %v1827_v55, %v2490_v34 }
 0x212   : > { %v2549_v18 = vpop.eup %1830  ;;  %1836 = vrcp.f32 %v2540_v9  ;;  %v2552_v19 = vadd.f32 1.0, %v1829_v12  ;;  %v1265_v57 = vsel %vm2500_vm5, %v1264_v36, %v1260_v13  ;;  %vm1273_vm13 = vweird.f32 %v1827_v55 }
 0x213   : > { %1838 = vpow2.f32 %v1678_v14  ;;  %1374 = vperm.xlu0 %1771, %v1265_v57   ;;  %746 = vperm.xlu2 %1773, %v667_v41   ;;  %v976_v21 = vsel %vm2560_vm11, %v2507_v42, %v972_v15  ;;  %v1269_v23 = vsub.f32 1.0, %v1268_v17  ;;  %v1291_v26 = vand.u32 2147483647, %v2540_v9  ;;  %vm1274_vm4 = vmor %vm1272_vm12, %vm1273_vm13 }
 0x214   : > { %1840 = vrcp.f32 %v2552_v19  ;;  %v1208_v24 = vpop.f32.mrf.mxu2  ;;  %751 = vperm.xlu1 %1772, %v682_v62   ;;  %v900_v8 = vpop.f32.mrf.mxu3  ;;  %v1293_v6 = vand.u32 2147483648, %v2540_v9  ;;  %v981_v2 = vsel %vm2535_vm9, %v980_v10, %v976_v21  ;;  %v1279_v36 = vor.u32 1.1754944e-38, %v1278_v20 }
 0x215   : > { %v1209_v27 = vadd.f32 %v1208_v24, %v2339_v32  ;;  %v901_v29 = vadd.f32 %v900_v8, %v2383_v16  ;;  %v1270_v30 = vmul.f32 %v1827_v55, %v1269_v23  ;;  %v984_v37 = vmul.f32 %v2549_v18, %v2510_v22 }
 0x216   : > { %v2578_v33 = vpop.eup %1832  ;;  %vm1287_vm2 = vweird.f32 %v2540_v9  ;;  %vm989_vm3 = vweird.f32 %v2549_v18  ;;  %v994_v44 = vand.u32 2147483648, %v2510_v22  ;;  %vm2595_vm5 = vcmp.eq.f32.partialorder %v1291_v26, 8.507059e+37 }
 0x217   : > { %v1835_v38 = vpop.eup %1834  ;;  %v1695_v3 = vmul.f32 -1.442695, %v1209_v27  ;;  %v1679_v39 = vmul.f32 -1.442695, %v901_v29  ;;  %v1271_v32 = vadd.f32 %v1827_v55, %v1270_v30  ;;  %v985_v42 = vsub.f32 1.0, %v984_v37  ;;  %vm990_vm8 = vmor %vm988_vm15, %vm989_vm3 }
 0x218   : > { %v1837_v40 = vpop.eup %1836  ;;  %v2587_v41 = vadd.f32 1.0, %v1835_v38  ;;  %v1294_v50 = vor.u32 1.1754944e-38, %v1293_v6  ;;  %vm2607_vm7 = vcmp.eq.f32.partialorder %v992_v43, 8.507059e+37  ;;  %v995_v1 = vor.u32 1.1754944e-38, %v994_v44 }
 0x219   : > { %v1839_v47 = vpop.eup %1838  ;;  %1842 = vpow2.f32 %v1695_v3  ;;  %v1275_v28 = vsel %vm1274_vm4, %v1827_v55, %v1271_v32  ;;  %v1283_v46 = vmul.f32 %v1837_v40, %v2540_v9  ;;  %v986_v63 = vmul.f32 %v2549_v18, %v985_v42 }
 0x21a   : > { %v2599_v31 = vpop.eup %1840  ;;  %1844 = vrcp.f32 %v2587_v41  ;;  %v2602_v34 = vadd.f32 1.0, %v1839_v47  ;;  %v1280_v52 = vsel %vm2570_vm14, %v1279_v36, %v1275_v28  ;;  %vm1288_vm6 = vweird.f32 %v1837_v40 }
 0x21b   : > { %1846 = vpow2.f32 %v1679_v39  ;;  %1070 = vperm.xlu0 %1771, %v981_v2   ;;  %1379 = vperm.xlu2 %1773, %v1280_v52   ;;  %v1284_v53 = vsub.f32 1.0, %v1283_v46  ;;  %v987_v0 = vadd.f32 %v2549_v18, %v986_v63  ;;  %v999_v4 = vmul.f32 %v2599_v31, %v2552_v19  ;;  %vm1289_vm11 = vmor %vm1287_vm2, %vm1288_vm6 }
 0x21c   : > { %1848 = vrcp.f32 %v2602_v34  ;;  %v1211_v56 = vpop.f32.mrf.mxu2  ;;  %v903_v62 = vpop.f32.mrf.mxu3  ;;  %vm1003_vm9 = vweird.f32 %v2552_v19  ;;  %v1007_v11 = vand.u32 2147483647, %v2552_v19  ;;  %v1009_v12 = vand.u32 2147483648, %v2552_v19 }
 0x21d   : > { %v1212_v14 = vadd.f32 %v1211_v56, %v2352_v51  ;;  %v904_v5 = vadd.f32 %v903_v62, %v2429_v54  ;;  %v1285_v7 = vmul.f32 %v1837_v40, %v1284_v53  ;;  %v991_v55 = vsel %vm990_vm8, %v2549_v18, %v987_v0 }
 0x21e   : > { %v1000_v10 = vsub.f32 1.0, %v999_v4  ;;  %vm1004_vm10 = vweird.f32 %v2599_v31  ;;  %v996_v22 = vsel %vm2607_vm7, %v995_v1, %v991_v55  ;;  %vm2634_vm12 = vcmp.eq.f32.partialorder %v1007_v11, 8.507059e+37 }
 0x21f   : > { %v1843_v13 = vpop.eup %1842  ;;  %v1696_v15 = vmul.f32 -1.442695, %v1212_v14  ;;  %v1680_v51 = vmul.f32 -1.442695, %v904_v5  ;;  %v1286_v17 = vadd.f32 %v1837_v40, %v1285_v7  ;;  %v1010_v24 = vor.u32 1.1754944e-38, %v1009_v12  ;;  %vm1005_vm13 = vmor %vm1003_vm9, %vm1004_vm10 }
 0x220   : > { %v1845_v57 = vpop.eup %1844  ;;  %v2626_v45 = vadd.f32 1.0, %v1843_v13  ;;  %v1001_v18 = vmul.f32 %v2599_v31, %v1000_v10  ;;  %vm1302_vm14 = vweird.f32 %v2587_v41  ;;  %v1306_v30 = vand.u32 2147483647, %v2587_v41 }
 0x221   : > { %v1847_v21 = vpop.eup %1846  ;;  %1850 = vpow2.f32 %v1696_v15  ;;  %v1290_v23 = vsel %vm1289_vm11, %v1837_v40, %v1286_v17  ;;  %v1298_v8 = vmul.f32 %v1845_v57, %v2587_v41  ;;  %vm1303_vm15 = vweird.f32 %v1845_v57 }
 0x222   : > { %v2639_v25 = vpop.eup %1848  ;;  %1852 = vrcp.f32 %v2626_v45  ;;  %v2642_v9 = vadd.f32 1.0, %v1847_v21  ;;  %v1295_v26 = vsel %vm2595_vm5, %v1294_v50, %v1290_v23  ;;  %v1002_v27 = vadd.f32 %v2599_v31, %v1001_v18  ;;  %vm1304_vm5 = vmor %vm1302_vm14, %vm1303_vm15 }
 0x223   : > { %1854 = vpow2.f32 %v1680_v51  ;;  %1384 = vperm.xlu1 %1772, %v1295_v26   ;;  %1075 = vperm.xlu2 %1773, %v996_v22   ;;  %v1299_v29 = vsub.f32 1.0, %v1298_v8  ;;  %v1308_v36 = vand.u32 2147483648, %v2587_v41  ;;  %v685_v37 = vmul.f32 %v2521_v48, %v2435_v58 }
 0x224   : > { %v1214_v6 = vpop.f32.mrf.mxu2  ;;  %v1006_v2 = vsel %vm1005_vm13, %v2599_v31, %v1002_v27  ;;  %1856 = vrcp.f32 %v2642_v9  ;;  %vm2661_vm2 = vcmp.eq.f32.partialorder %v1306_v30, 8.507059e+37  ;;  %vm689_vm3 = vweird.f32 %v2435_v58 }
 0x225   : > { %v1215_v38 = vadd.f32 %v1214_v6, %v2383_v16  ;;  %v1011_v19 = vsel %vm2634_vm12, %v1010_v24, %v1006_v2  ;;  %v1300_v3 = vmul.f32 %v1845_v57, %v1299_v29  ;;  %v686_v32 = vsub.f32 1.0, %v685_v37 }
 0x226   : > { %vm690_vm4 = vweird.f32 %v2521_v48  ;;  %v693_v44 = vand.u32 2147483647, %v2435_v58  ;;  %v695_v16 = vand.u32 2147483648, %v2435_v58  ;;  %v1309_v46 = vor.u32 1.1754944e-38, %v1308_v36 }
 0x227   : > { %v1851_v40 = vpop.eup %1850  ;;  %v1697_v42 = vmul.f32 -1.442695, %v1215_v38  ;;  %v1301_v43 = vadd.f32 %v1845_v57, %v1300_v3  ;;  %v687_v49 = vmul.f32 %v2521_v48, %v686_v32  ;;  %v700_v50 = vmul.f32 %v2528_v60, %v2468_v59  ;;  %vm2683_vm6 = vmor %vm689_vm3, %vm690_vm4  ;;  %v1872_v32 = vld [vmem:[%s2195_s25] sm:$0xff] }
 0x228   : > { %v2669_v47 = vpop.eup %1852  ;;  %v2671_v28 = vadd.f32 1.0, %v1851_v40  ;;  %v696_v53 = vor.u32 1.1754944e-38, %v695_v16  ;;  %vm704_vm7 = vweird.f32 %v2468_v59  ;;  %vm694_vm8 = vcmp.eq.f32.partialorder %v693_v44, 8.507059e+37 }
 0x229   : > { %v1855_v31 = vpop.eup %1854  ;;  %1858 = vpow2.f32 %v1697_v42  ;;  %v1305_v52 = vsel %vm1304_vm5, %v1845_v57, %v1301_v43  ;;  %v688_v56 = vadd.f32 %v2521_v48, %v687_v49  ;;  %v701_v58 = vsub.f32 1.0, %v700_v50 }
 0x22a   : > { %v2688_v41 = vadd.f32 1.0, %v1855_v31  ;;  %v1310_v35 = vsel %vm2661_vm2, %v1309_v46, %v1305_v52  ;;  %v2693_v62 = vpop.eup %1856  ;;  %vm705_vm9 = vweird.f32 %v2528_v60  ;;  %v708_v0 = vand.u32 2147483647, %v2468_v59 }
 0x22b   : > { %1080 = vperm.xlu1 %1772, %v1011_v19   ;;  %1389 = vperm.xlu0 %1771, %v1310_v35   ;;  %v710_v1 = vand.u32 2147483648, %v2468_v59  ;;  %1860 = vrcp.f32 %v2671_v28  ;;  %v692_v14 = vsel %vm2683_vm6, %v2521_v48, %v688_v56  ;;  %v1014_v5 = vmul.f32 %v2639_v25, %v2602_v34  ;;  %vm2709_vm10 = vmor %vm704_vm7, %vm705_vm9 }
 0x22c   : > { %v1217_v4 = vpop.f32.mrf.mxu2  ;;  %1862 = vrcp.f32 %v2688_v41  ;;  %v697_v55 = vsel %vm694_vm8, %v696_v53, %v692_v14  ;;  %v702_v10 = vmul.f32 %v2528_v60, %v701_v58  ;;  %vm2713_vm11 = vcmp.eq.f32.partialorder %v708_v0, 8.507059e+37 }
 0x22d   : > { %v1218_v7 = vadd.f32 %v1217_v4, %v2429_v54  ;;  %756 = vperm.xlu2 %1773, %v697_v55   ;;  %v711_v48 = vor.u32 1.1754944e-38, %v710_v1  ;;  %v1015_v13 = vsub.f32 1.0, %v1014_v5  ;;  %vm1018_vm12 = vweird.f32 %v2602_v34 }
 0x22e   : > { %v703_v51 = vadd.f32 %v2528_v60, %v702_v10  ;;  %v1024_v17 = vand.u32 2147483648, %v2602_v34  ;;  %v1313_v59 = vmul.f32 %v2669_v47, %v2626_v45  ;;  %vm1019_vm13 = vweird.f32 %v2639_v25 }
 0x22f   : > { %v1859_v15 = vpop.eup %1858  ;;  %v1698_v54 = vmul.f32 -1.442695, %v1218_v7  ;;  %v1016_v22 = vmul.f32 %v2639_v25, %v1015_v13  ;;  %v1022_v18 = vand.u32 2147483647, %v2602_v34  ;;  %vm1318_vm14 = vweird.f32 %v2669_v47  ;;  %vm1020_vm15 = vmor %vm1018_vm12, %vm1019_vm13 }
 0x230   : > { %v2722_v57 = vadd.f32 1.0, %v1859_v15  ;;  %v707_v20 = vsel %vm2709_vm10, %v2528_v60, %v703_v51  ;;  %v1025_v21 = vor.u32 1.1754944e-38, %v1024_v17  ;;  %v1314_v23 = vsub.f32 1.0, %v1313_v59  ;;  %v1885_v51 = vld [vmem:[%s2181_s24 + $0x50] sm:$0xff] }
 0x231   : > { %1864 = vpow2.f32 %v1698_v54  ;;  %v2730_v24 = vpop.eup %1860  ;;  %v712_v8 = vsel %vm2713_vm11, %v711_v48, %v707_v20  ;;  %v1017_v26 = vadd.f32 %v2639_v25, %v1016_v22  ;;  %v1321_v29 = vand.u32 2147483647, %v2626_v45 }
 0x232   : > { %1866 = vrcp.f32 %v2722_v57  ;;  %v2737_v27 = vpop.eup %1862  ;;  %v1315_v60 = vmul.f32 %v2669_v47, %v1314_v23  ;;  %v1323_v30 = vand.u32 2147483648, %v2626_v45  ;;  %v715_v6 = vmul.f32 %v2578_v33, %v2530_v61 }
 0x233   : > { %761 = vperm.xlu1 %1772, %v712_v8   ;;  %v1021_v2 = vsel %vm1020_vm15, %v2639_v25, %v1017_v26  ;;  %vm1023_vm2 = vcmp.eq.f32.partialorder %v1022_v18, 8.507059e+37  ;;  %vm1317_vm3 = vweird.f32 %v2626_v45  ;;  %v723_v36 = vand.u32 2147483647, %v2530_v61 }
 0x234   : > { %v1026_v37 = vsel %vm1023_vm2, %v1025_v21, %v1021_v2  ;;  %v1316_v34 = vadd.f32 %v2669_v47, %v1315_v60  ;;  %vm719_vm4 = vweird.f32 %v2530_v61  ;;  %vm720_vm5 = vweird.f32 %v2578_v33  ;;  %vm1319_vm6 = vmor %vm1317_vm3, %vm1318_vm14 }
 0x235   : > { %1085 = vperm.xlu0 %1771, %v1026_v37   ;;  %v1324_v38 = vor.u32 1.1754944e-38, %v1323_v30  ;;  %v716_v19 = vsub.f32 1.0, %v715_v6  ;;  %v725_v25 = vand.u32 2147483648, %v2530_v61  ;;  %v1029_v45 = vmul.f32 %v2693_v62, %v2642_v9  ;;  %vm2773_vm10 = vmor %vm719_vm4, %vm720_vm5 }
 0x236   : > { %v1320_v39 = vsel %vm1319_vm6, %v2669_v47, %v1316_v34  ;;  %vm1322_vm7 = vcmp.eq.f32.partialorder %v1321_v29, 8.507059e+37  ;;  %vm2758_vm8 = vcmp.eq.f32.partialorder %v723_v36, 8.507059e+37  ;;  %v1037_v40 = vand.u32 2147483647, %v2642_v9 }
 0x237   : > { %v1865_v3 = vpop.eup %1864  ;;  %v1325_v44 = vsel %vm1322_vm7, %v1324_v38, %v1320_v39  ;;  %v717_v16 = vmul.f32 %v2578_v33, %v716_v19  ;;  %vm1033_vm9 = vweird.f32 %v2642_v9  ;;  %v726_v46 = vor.u32 1.1754944e-38, %v725_v25 }
 0x238   : > { %v2763_v42 = vpop.eup %1866  ;;  %v2765_v43 = vadd.f32 1.0, %v1865_v3  ;;  %1394 = vperm.xlu2 %1773, %v1325_v44   ;;  %v1030_v49 = vsub.f32 1.0, %v1029_v45  ;;  %v1039_v50 = vand.u32 2147483648, %v2642_v9  ;;  %v1044_v31 = vmul.f32 %v2737_v27, %v2688_v41  ;;  %v1871_v45 = vld [vmem:[%s2181_s24 + $0x8] sm:$0xff] }
 0x239   : > { %v718_v52 = vadd.f32 %v2578_v33, %v717_v16  ;;  %vm1034_vm11 = vweird.f32 %v2693_v62  ;;  %vm2783_vm12 = vcmp.eq.f32.partialorder %v1037_v40, 8.507059e+37  ;;  %vm1048_vm13 = vweird.f32 %v2688_v41  ;;  %v1874_v16 = vld [vmem:[%s2181_s24 + $0x18] sm:$0xff] }
 0x23a   : > { %1868 = vrcp.f32 %v2765_v43  ;;  %v1031_v61 = vmul.f32 %v2693_v62, %v1030_v49  ;;  %v1045_v53 = vsub.f32 1.0, %v1044_v31  ;;  %v1052_v35 = vand.u32 2147483647, %v2688_v41  ;;  %vm1035_vm15 = vmor %vm1033_vm9, %vm1034_vm11  ;;  %v1875_v49 = vld [vmem:[%s2181_s24 + $0x20] sm:$0xff]  ;;  %v1876_v31 = vld [vmem:[%s2181_s24 + $0x28] sm:$0xff] }
 0x23b   : > { %v722_v56 = vsel %vm2773_vm10, %v2578_v33, %v718_v52  ;;  %vm1049_vm14 = vweird.f32 %v2737_v27  ;;  %v1054_v58 = vand.u32 2147483648, %v2688_v41  ;;  %v1343_v0 = vmul.f32 %v2763_v42, %v2722_v57 }
 0x23c   : > { %v727_v1 = vsel %vm2758_vm8, %v726_v46, %v722_v56  ;;  %v1032_v4 = vadd.f32 %v2693_v62, %v1031_v61  ;;  %v1040_v14 = vor.u32 1.1754944e-38, %v1039_v50  ;;  %v1046_v5 = vmul.f32 %v2737_v27, %v1045_v53  ;;  %vm1050_vm4 = vmor %vm1048_vm13, %vm1049_vm14  ;;  %v1877_v61 = vld [vmem:[%s2181_s24 + $0x30] sm:$0xff] }
 0x23d   : > { %766 = vperm.xlu0 %1771, %v727_v1   ;;  %vm2805_vm2 = vcmp.eq.f32.partialorder %v1052_v35, 8.507059e+37  ;;  %v1344_v7 = vsub.f32 1.0, %v1343_v0  ;;  %vm1347_vm3 = vweird.f32 %v2722_v57  ;;  %v1351_v55 = vand.u32 2147483647, %v2722_v57  ;;  %v1878_v35 = vld [vmem:[%s2181_s24 + $0x38] sm:$0xff]  ;;  %v1879_v0 = vld [vmem:[%s2225_s26 + $0x8] sm:$0xff] }
 0x23e   : > { %v1036_v10 = vsel %vm1035_vm15, %v2693_v62, %v1032_v4  ;;  %v1047_v11 = vadd.f32 %v2737_v27, %v1046_v5  ;;  %v1353_v12 = vand.u32 2147483648, %v2722_v57  ;;  %v1328_v48 = vmul.f32 %v2730_v24, %v2671_v28  ;;  %v1880_v5 = vld [vmem:[%s2195_s25 + $0x18] sm:$0xff] }
 0x23f   : > { %v1041_v13 = vsel %vm2783_vm12, %v1040_v14, %v1036_v10  ;;  %v1055_v15 = vor.u32 1.1754944e-38, %v1054_v58  ;;  %v1345_v54 = vmul.f32 %v2763_v42, %v1344_v7  ;;  %vm1348_vm5 = vweird.f32 %v2763_v42  ;;  %v1881_v7 = vld [vmem:[%s2195_s25 + $0x8] sm:$0xff] }
 0x240   : > { %v1869_v9 = vpop.eup %1868  ;;  %1090 = vperm.xlu2 %1773, %v1041_v13   ;;  %v1051_v62 = vsel %vm1050_vm4, %v2737_v27, %v1047_v11  ;;  %vm2825_vm6 = vcmp.eq.f32.partialorder %v1351_v55, 8.507059e+37  ;;  %v1329_v17 = vsub.f32 1.0, %v1328_v48  ;;  %vm1332_vm7 = vweird.f32 %v2671_v28  ;;  %vm1349_vm9 = vmor %vm1347_vm3, %vm1348_vm5  ;;  %v1882_v11 = vld [vmem:[%s2225_s26] sm:$0xff] }
 0x241   : > { %v1056_v59 = vsel %vm2805_vm2, %v1055_v15, %v1051_v62  ;;  %v1346_v41 = vadd.f32 %v2763_v42, %v1345_v54  ;;  %v1354_v22 = vor.u32 1.1754944e-38, %v1353_v12  ;;  %vm1333_vm8 = vweird.f32 %v2730_v24  ;;  %v1884_v15 = vld [vmem:[%s2181_s24 + $0x48] sm:$0xff] }
 0x242   : > { %1095 = vperm.xlu1 %1772, %v1056_v59   ;;  %v1330_v18 = vmul.f32 %v2730_v24, %v1329_v17  ;;  %v1336_v20 = vand.u32 2147483647, %v2671_v28  ;;  %v1338_v21 = vand.u32 2147483648, %v2671_v28  ;;  %v1358_v23 = vmul.f32 %v1869_v9, %v2765_v43  ;;  %vm1334_vm12 = vmor %vm1332_vm7, %vm1333_vm8  ;;  %v1886_v59 = vld [vmem:[%s2181_s24 + $0x58] sm:$0xff] }
 0x243   : > { %v1350_v8 = vsel %vm1349_vm9, %v2763_v42, %v1346_v41  ;;  %vm1362_vm10 = vweird.f32 %v2765_v43  ;;  %vm1363_vm11 = vweird.f32 %v1869_v9  ;;  %v1366_v26 = vand.u32 2147483647, %v2765_v43 }
 0x244   : > { %v1355_v27 = vsel %vm2825_vm6, %v1354_v22, %v1350_v8  ;;  %v1331_v57 = vadd.f32 %v2730_v24, %v1330_v18  ;;  %v1359_v60 = vsub.f32 1.0, %v1358_v23  ;;  %v1368_v29 = vand.u32 2147483648, %v2765_v43  ;;  %vm1364_vm13 = vmor %vm1362_vm10, %vm1363_vm11  ;;  %v1873_v43 = vld [vmem:[%s2181_s24 + $0x10] sm:$0xff]  ;;  %v1888_v23 = vld [vmem:[%s2225_s26 + $0x20] sm:$0xff] }
 0x245   : > { %1404 = vperm.xlu0 %1771, %v1355_v27   ;;  %v1339_v2 = vor.u32 1.1754944e-38, %v1338_v21  ;;  %vm1337_vm14 = vcmp.eq.f32.partialorder %v1336_v20, 8.507059e+37  ;;  %vm1367_vm15 = vcmp.eq.f32.partialorder %v1366_v26, 8.507059e+37  ;;  %v1887_v18 = vld [vmem:[%s2195_s25 + $0x10] sm:$0xff] }
 0x246   : > { %v1335_v30 = vsel %vm1334_vm12, %v2730_v24, %v1331_v57  ;;  %v1360_v6 = vmul.f32 %v1869_v9, %v1359_v60  ;;  %v1369_v36 = vor.u32 1.1754944e-38, %v1368_v29  ;;  %v1870_v24 = vld [vmem:[%s2181_s24] sm:$0xff]  ;;  %v1889_v27 = vld [vmem:[%s2225_s26 + $0x10] sm:$0xff] }
 0x247   : > { %v1340_v34 = vsel %vm1337_vm14, %v1339_v2, %v1335_v30  ;;  %v1890_v29 = vld [vmem:[%s2195_s25 + $0x30] sm:$0xff] }
 0x248   : > { %v1361_v37 = vadd.f32 %v1869_v9, %v1360_v6 }
 0x24a   : > { %1399 = vperm.xlu1 %1772, %v1340_v34   ;;  %v1365_v38 = vsel %vm1364_vm13, %v1869_v9, %v1361_v37  ;;  %v1883_v9 = vld [vmem:[%s2181_s24 + $0x40] sm:$0xff]  ;;  %v1892_v34 = vld [vmem:[%s2225_s26 + $0x18] sm:$0xff] }
 0x24b   : > { %v1370_v19 = vsel %vm1367_vm15, %v1369_v36, %v1365_v38  ;;  %v1891_v36 = vld [vmem:[%s2195_s25 + $0x20] sm:$0xff] }
 0x24c   : > { %1409 = vperm.xlu2 %1773, %v1370_v19  }
 0x258   : > { %v732_v28 = vpop.permute.xlu0 %731 }
 0x259   : > { %v769_v25 = vmul.f32 %v1870_v24, %v732_v28  ;;  %v770_v3 = vmul.f32 %v1871_v45, %v732_v28  ;;  %v1893_v28 = vld [vmem:[%s2181_s24 + $0x60] sm:$0xff] }
 0x25b   : > { %785 = vst [vmem:[%s2857_s23] sm:$0xff] %v769_v25  ;;  %v1894_v25 = vld [vmem:[%s2181_s24 + $0x68] sm:$0xff] }
 0x25c   : > { %786 = vst [vmem:[%s2857_s23 + $0x8] sm:$0xff] %v770_v3 }
 0x25d   : > { %v1061_v39 = vpop.permute.xlu2 %1060 }
 0x25e   : > { %v1098_v40 = vmul.f32 %v1872_v32, %v1061_v39  ;;  %v1895_v39 = vld [vmem:[%s2225_s26 + $0x38] sm:$0xff] }
 0x260   : > { %1106 = vst.msk [vmem:[%s2862_s28] sm:$0xff] %vm482_vm0, %v1098_v40  ;;  %v737_v42 = vpop.permute.xlu1 %736 }
 0x261   : > { %v771_v44 = vmul.f32 %v1873_v43, %v737_v42  ;;  %v772_v47 = vmul.f32 %v1874_v16, %v737_v42  ;;  %v1896_v42 = vld [vmem:[%s2195_s25 + $0x28] sm:$0xff]  ;;  %v1897_v16 = vld [vmem:[%s2181_s24 + $0x70] sm:$0xff] }
 0x263   : > { %787 = vst [vmem:[%s2857_s23 + $0x10] sm:$0xff] %v771_v44 }
 0x264   : > { %788 = vst [vmem:[%s2857_s23 + $0x18] sm:$0xff] %v772_v47 }
 0x265   : > { %v742_v46 = vpop.permute.xlu2 %741 }
 0x266   : > { %v773_v50 = vmul.f32 %v1875_v49, %v742_v46  ;;  %v774_v52 = vmul.f32 %v1876_v31, %v742_v46  ;;  %v1898_v46 = vld [vmem:[%s2181_s24 + $0x78] sm:$0xff]  ;;  %s1952_s24 = scalar_lea.hbm %s3011_s7, 256 }
 0x267   : > { %p1954_p3 = scmp.lt.s32.totalorder %s1952_s24, %s1948_s0 }
 0x268   : > { %789 = vst [vmem:[%s2857_s23 + $0x20] sm:$0xff] %v773_v50 }
 0x269   : > { %790 = vst [vmem:[%s2857_s23 + $0x28] sm:$0xff] %v774_v52  ;;  %p1955_p4 = por %p1954_p3, %p1953_p1 }
 0x26b   : > { %p1956_p7 = pnand %p1955_p4, %p1951_p0 }
 0x26d   : > { %v747_v63 = vpop.permute.xlu2 %746 }
 0x26e   : > { %v775_v53 = vmul.f32 %v1877_v61, %v747_v63  ;;  %v776_v56 = vmul.f32 %v1878_v35, %v747_v63 }
 0x270   : > { %791 = vst [vmem:[%s2857_s23 + $0x30] sm:$0xff] %v775_v53 }
 0x271   : > { %792 = vst [vmem:[%s2857_s23 + $0x38] sm:$0xff] %v776_v56 }
 0x275   : > { %v1380_v58 = vpop.permute.xlu2 %1379 }
 0x276   : > { %v1413_v1 = vmul.f32 %v1879_v0, %v1380_v58 }
 0x278   : > { %1421 = vst.msk [vmem:[%s2882_s18 + $0x8] sm:$0xff] %vm1122_vm1, %v1413_v1 }
 0x27d   : > { %v1076_v4 = vpop.permute.xlu2 %1075  ;;  %v1066_v14 = vpop.permute.xlu1 %1065 }
 0x27e   : > { %v1101_v33 = vmul.f32 %v1880_v5, %v1076_v4  ;;  %v1099_v55 = vmul.f32 %v1881_v7, %v1066_v14 }
 0x280   : > { %1109 = vst.msk [vmem:[%s2862_s28 + $0x18] sm:$0xff] %vm482_vm0, %v1101_v33 }
 0x281   : > { %1107 = vst.msk [vmem:[%s2862_s28 + $0x8] sm:$0xff] %vm482_vm0, %v1099_v55 }
 0x285   : > { %v1375_v10 = vpop.permute.xlu0 %1374 }
 0x286   : > { %v1412_v12 = vmul.f32 %v1882_v11, %v1375_v10  ;;  %v752_v48 = vpop.permute.xlu1 %751 }
 0x287   : > { %v777_v13 = vmul.f32 %v1883_v9, %v752_v48  ;;  %v778_v54 = vmul.f32 %v1884_v15, %v752_v48  ;;  %v757_v62 = vpop.permute.xlu2 %756 }
 0x288   : > { %1420 = vst.msk [vmem:[%s2882_s18] sm:$0xff] %vm1122_vm1, %v1412_v12  ;;  %v779_v17 = vmul.f32 %v1885_v51, %v757_v62  ;;  %v780_v41 = vmul.f32 %v1886_v59, %v757_v62 }
 0x289   : > { %793 = vst [vmem:[%s2857_s23 + $0x40] sm:$0xff] %v777_v13 }
 0x28a   : > { %794 = vst [vmem:[%s2857_s23 + $0x48] sm:$0xff] %v778_v54 }
 0x28b   : > { %795 = vst [vmem:[%s2857_s23 + $0x50] sm:$0xff] %v779_v17 }
 0x28c   : > { %796 = vst [vmem:[%s2857_s23 + $0x58] sm:$0xff] %v780_v41 }
 0x28d   : > { %v1071_v22 = vpop.permute.xlu0 %1070 }
 0x28e   : > { %v1100_v20 = vmul.f32 %v1887_v18, %v1071_v22 }
 0x290   : > { %1108 = vst.msk [vmem:[%s2862_s28 + $0x10] sm:$0xff] %vm482_vm0, %v1100_v20 }
 0x292   : > { %v1395_v21 = vpop.permute.xlu2 %1394 }
 0x293   : > { %v1416_v8 = vmul.f32 %v1888_v23, %v1395_v21 }
 0x295   : > { %v1385_v26 = vpop.permute.xlu1 %1384  ;;  %1424 = vst.msk [vmem:[%s2882_s18 + $0x20] sm:$0xff] %vm1122_vm1, %v1416_v8 }
 0x296   : > { %v1414_v57 = vmul.f32 %v1889_v27, %v1385_v26 }
 0x298   : > { %1422 = vst.msk [vmem:[%s2882_s18 + $0x10] sm:$0xff] %vm1122_vm1, %v1414_v57 }
 0x29a   : > { %v1091_v60 = vpop.permute.xlu2 %1090 }
 0x29b   : > { %v1104_v30 = vmul.f32 %v1890_v29, %v1091_v60 }
 0x29d   : > { %v1081_v6 = vpop.permute.xlu1 %1080  ;;  %v1390_v2 = vpop.permute.xlu0 %1389  ;;  %1112 = vst.msk [vmem:[%s2862_s28 + $0x30] sm:$0xff] %vm482_vm0, %v1104_v30 }
 0x29e   : > { %v1102_v37 = vmul.f32 %v1891_v36, %v1081_v6  ;;  %v1415_v38 = vmul.f32 %v1892_v34, %v1390_v2 }
 0x2a0   : > { %1110 = vst.msk [vmem:[%s2862_s28 + $0x20] sm:$0xff] %vm482_vm0, %v1102_v37 }
 0x2a1   : > { %1423 = vst.msk [vmem:[%s2882_s18 + $0x18] sm:$0xff] %vm1122_vm1, %v1415_v38 }
 0x2a5   : > { %v762_v19 = vpop.permute.xlu1 %761 }
 0x2a6   : > { %v781_v24 = vmul.f32 %v1893_v28, %v762_v19  ;;  %v782_v45 = vmul.f32 %v1894_v25, %v762_v19  ;;  %v1410_v3 = vpop.permute.xlu2 %1409 }
 0x2a7   : > { %v1419_v32 = vmul.f32 %v1895_v39, %v1410_v3  ;;  %v1086_v40 = vpop.permute.xlu0 %1085 }
 0x2a8   : > { %797 = vst [vmem:[%s2857_s23 + $0x60] sm:$0xff] %v781_v24  ;;  %v1103_v43 = vmul.f32 %v1896_v42, %v1086_v40 }
 0x2a9   : > { %798 = vst [vmem:[%s2857_s23 + $0x68] sm:$0xff] %v782_v45 }
 0x2aa   : > { %1427 = vst.msk [vmem:[%s2882_s18 + $0x38] sm:$0xff] %vm1122_vm1, %v1419_v32 }
 0x2ab   : > { %1111 = vst.msk [vmem:[%s2862_s28 + $0x28] sm:$0xff] %vm482_vm0, %v1103_v43 }
 0x2af   : > { %v767_v44 = vpop.permute.xlu0 %766 }
 0x2b0   : > { %v783_v47 = vmul.f32 %v1897_v16, %v767_v44  ;;  %v784_v49 = vmul.f32 %v1898_v46, %v767_v44 }
 0x2b2   : > { %799 = vst [vmem:[%s2857_s23 + $0x70] sm:$0xff] %v783_v47 }
 0x2b3   : > { %800 = vst [vmem:[%s2857_s23 + $0x78] sm:$0xff] %v784_v49 }
 0x2b4   : > { %v1096_v50 = vpop.permute.xlu1 %1095 }
 0x2b5   : > { %1959 = shalt.err (!%p1956_p7)
}
 0x2b6   : > { %s2035_s1 = smov 256   ;;  %s2036_s23 = smov 16   ;;  %v1899_v31 = vld [vmem:[%s2195_s25 + $0x38] sm:$0xff]  ;;  %v1900_v61 = vld [vmem:[%s2225_s26 + $0x30] sm:$0xff] }
 0x2b7   : > { %1715 = dma.vmem_to_hbm [thread:$0]  (%p2139_p11), %s2938_s19, 2048, %s1454_s11, %s1429_s16, %s2035_s1, %s2035_s1, %s2036_s23   ;;  %v1105_v52 = vmul.f32 %v1899_v31, %v1096_v50  ;;  %v1405_v63 = vpop.permute.xlu0 %1404 }
 0x2b8   : > { %v1418_v53 = vmul.f32 %v1900_v61, %v1405_v63  ;;  %s1434_s2 = scalar_lea.sflag [#allocation7], %s2175_s14  ;;  %s1974_s17 = sshra.s32 %s1471_s13, 4  ;;  %s1975_s17 = int_to_ptr.hbm [resolvable:$true] %s1974_s17 }
 0x2b9   : > { %1113 = vst.msk [vmem:[%s2862_s28 + $0x38] sm:$0xff] %vm482_vm0, %v1105_v52  ;;  %s1976_s0 = scalar_lea.hbm %s1975_s17, 64  ;;  %s1980_s19 = scalar_lea.hbm %s3012_s8, 128 }
 0x2ba   : > { %p1977_p5 = scmp.ne.s32.totalorder %s1975_s17, %s1976_s0  ;;  %p1981_p2 = scmp.lt.s32.totalorder %s1975_s17, %s3012_s8 }
 0x2bb   : > { %p1982_p9 = scmp.lt.s32.totalorder %s1980_s19, %s1976_s0 }
 0x2bc   : > { %p1978_p8 = pnand %p1977_p5, %p2139_p11 }
 0x2bd   : > { %p1983_p6 = por %p1982_p9, %p1981_p2 }
 0x2be   : > { %p1979_p10 = pneg %p1978_p8 }
 0x2c0   : > { %p1984_p13 = pnand %p1983_p6, %p1979_p10 }
 0x2c2   : > { %1987 = shalt.err (!%p1984_p13)
}
 0x2c3   : > { %s2037_s14 = smov 128   ;;  %s2038_s28 = smov 8   ;;  %1426 = vst.msk [vmem:[%s2882_s18 + $0x30] sm:$0xff] %vm1122_vm1, %v1418_v53  ;;  %v1400_v35 = vpop.permute.xlu1 %1399  ;;  %v1901_v56 = vld [vmem:[%s2225_s26 + $0x28] sm:$0xff] }
 0x2c4   : > { %1716 = dma.vmem_to_hbm [thread:$0]  (%p2139_p11), %s2951_s29, 1024, %s1471_s13, %s1434_s2, %s2037_s14, %s2037_s14, %s2038_s28   ;;  %v1417_v58 = vmul.f32 %v1901_v56, %v1400_v35 }
 0x2c6   : > { %1425 = vst.msk [vmem:[%s2882_s18 + $0x28] sm:$0xff] %vm1122_vm1, %v1417_v58 }
 0x2c7 PF: > { %s1488_s16 = sand.u32 1, %s2018_s30   ;;  %p3079_p0 = scmp.ge.s32.totalorder %s2030_s12, 2 }
 0x2c8   : > { %s1489_s24 = scalar_lea.sflag [#allocation4], %s1488_s16 }
 0x2c9   : > { %p1724_p1 = pnand %p3079_p0, %p2143_p12 }
 0x2cb   : > { %p1725_p3 = pneg %p1724_p1 }
 0x2cd   : > { %2009 = dma.done.wait (%p1725_p3), %s1489_s24, 2048  }
 0x2ce   : > { %2011 = vsyncadd (%p1725_p3), %s1489_s24, 4294965248  ;;  %s1499_s21 = scalar_lea.sflag [#allocation7], %s1488_s16 }
 0x2cf   : > { %2013 = dma.done.wait (%p1725_p3), %s1499_s21, 1024  }
 0x2d0   : > { %2015 = vsyncadd (%p1725_p3), %s1499_s21, 4294966272  ;;  %s3080_s12 = sld [smem:[#allocation12_spill]]  ;;  %s3083_s30 = smov %s2022_s10 }
 0x2d1   : > { %s3081_s26 = sld [smem:[#allocation11_spill]] }
 0x2d2   : > { %s3082_s11 = sld [smem:[#allocation13_spill]] }
 0x2d6   : > { %p26_p11 = scmp.ge.s32.totalorder %s3080_s12, 4  }
 0x2d7   : > { %s3084_s10 = smov %s3081_s26 }
 0x2d8   :  { %28 = sbr.rel (!%p26_p11) target bundleno = 11 (0xb), region = 128 }
 0x2dd   :  { %1513 = vsyncpa [#allocation3], 1 }
 0x2de   :  { %1515 = vsyncpa [#allocation3 + $0x1], 1 }
 0x2df   :  { %1516 = vsyncpa [#allocation4], 1 }
 0x2e0   :  { %1518 = vsyncpa [#allocation4 + $0x1], 1 }
 0x2e1   :  { %1519 = vsyncpa [#allocation7], 1 }
 0x2e2   :  { %1521 = vsyncpa [#allocation7 + $0x1], 1 }

</bundles_post_ra>
